<compile_context>
chip_gen: v5e
topology: v5e:2x2
jax: 0.10.0
libtpu: 0.0.40
codegen_flags: <defaults>
</compile_context>

<pallas_src>
import jax
import jax.numpy as jnp
from jax.experimental import pallas as pl
from jax.experimental.pallas import tpu as pltpu

BN_EPS = 1e-5
D_IN = 784
D_HID = 512
D_OUT = 10
D_OUT_PAD = 128  # lane-dense output slab (avoids masked vst.msk); sliced to 10 in wrapper


def _make_phase1_kernel(tb, b_true, b_pad):
    """relu(x@W1+b1)@W2+b2 per batch tile + per-tile BatchNorm partial sums."""
    need_mask = b_pad != b_true

    def kernel(x_ref, w1_ref, b1_ref, w2_ref, b2_ref, h2_ref, stats_ref):
        x = x_ref[...]                                                      # (tb, 784) bf16
        h1 = jnp.dot(x, w1_ref[...], preferred_element_type=jnp.float32) + b1_ref[...]
        h1 = jnp.maximum(h1, 0.0)
        h2 = jnp.dot(h1.astype(jnp.bfloat16), w2_ref[...],
                     preferred_element_type=jnp.float32) + b2_ref[...]      # (tb, 512) f32
        h2_ref[...] = h2

        if need_mask:  # zero padded rows so they don't pollute the global BN statistics
            row = (jax.lax.broadcasted_iota(jnp.int32, (tb, 1), 0)
                   + pl.program_id(0) * tb)
            h2s = jnp.where(row < b_true, h2, 0.0)
        else:
            h2s = h2
        s = jnp.sum(h2s, axis=0, keepdims=True)                             # (1, 512)
        ss = jnp.sum(h2s * h2s, axis=0, keepdims=True)                      # (1, 512)
        stats = jnp.concatenate([s, ss], axis=0)                            # (2, 512)
        stats_ref[...] = stats.reshape(stats_ref.shape)                     # (1, 2, 512)

    return kernel


def _phase2_kernel(h2_ref, scale_ref, shift_ref, w3_ref, b3_ref, o_ref):
    """Folded BatchNorm (one mul + one add) + ReLU + last (lane-padded) linear."""
    hn = h2_ref[...] * scale_ref[...] + shift_ref[...]
    h3 = jnp.maximum(hn, 0.0).astype(jnp.bfloat16)
    o_ref[...] = jnp.dot(h3, w3_ref[...],
                         preferred_element_type=jnp.float32) + b3_ref[...]


def mlp_forward(x_nchw, params, tb_target=256):
    B = x_nchw.shape[0]
    w1, b1, w2, b2, gamma, beta, w3, b3 = params

    # torch.flatten(x, start_dim=1); bf16 operands, f32 accumulation in-kernel
    x = x_nchw.reshape(B, -1).astype(jnp.bfloat16)
    w1b = w1.astype(jnp.bfloat16)
    w2b = w2.astype(jnp.bfloat16)
    w3p = jnp.pad(w3.astype(jnp.bfloat16), ((0, 0), (0, D_OUT_PAD - D_OUT)))
    b3p = jnp.pad(b3, ((0, 0), (0, D_OUT_PAD - D_OUT)))

    # Batch tiling: tb rows per grid step (multiple of 8, up to 256 for the
    # 256-wide MXU on v6e/v7x); weights are re-used across every tile.
    tb = min(tb_target, max(8, ((B + 7) // 8) * 8))
    num_tiles = (B + tb - 1) // tb
    b_pad = num_tiles * tb
    if b_pad != B:
        x = jnp.pad(x, ((0, b_pad - B), (0, 0)))

    resident2 = lambda shape: pl.BlockSpec(shape, lambda i: (0, 0))  # stays in VMEM
    cparams = pltpu.CompilerParams(dimension_semantics=("parallel",))

    # ---- phase 1: first two linears + BN partial sums -------------------------
    h2, stats = pl.pallas_call(
        _make_phase1_kernel(tb, B, b_pad),
        grid=(num_tiles,),
        out_shape=(
            jax.ShapeDtypeStruct((b_pad, D_HID), jnp.float32),
            jax.ShapeDtypeStruct((num_tiles, 2, D_HID), jnp.float32),
        ),
        in_specs=[
            pl.BlockSpec((tb, D_IN), lambda i: (i, 0)),
            resident2((D_IN, D_HID)),
            resident2((1, D_HID)),
            resident2((D_HID, D_HID)),
            resident2((1, D_HID)),
        ],
        out_specs=(
            pl.BlockSpec((tb, D_HID), lambda i: (i, 0)),
            pl.BlockSpec((1, 2, D_HID), lambda i: (i, 0, 0)),
        ),
        compiler_params=cparams,
    )(x, w1b, b1, w2b, b2)

    # ---- global BatchNorm statistics (training mode, biased variance) ---------
    sums = jnp.sum(stats, axis=0)                  # (2, 512)
    mean = sums[0:1] / B                           # (1, 512)
    ex2 = sums[1:2] / B
    var = jnp.maximum(ex2 - mean * mean, 0.0)
    scale = gamma * jax.lax.rsqrt(var + BN_EPS)    # fold BN to one mul + one add
    shift = beta - mean * scale

    # ---- phase 2: BN apply + ReLU + last linear (lane-padded to 128) ----------
    out = pl.pallas_call(
        _phase2_kernel,
        grid=(num_tiles,),
        out_shape=jax.ShapeDtypeStruct((b_pad, D_OUT_PAD), jnp.float32),
        in_specs=[
            pl.BlockSpec((tb, D_HID), lambda i: (i, 0)),
            resident2((1, D_HID)),
            resident2((1, D_HID)),
            resident2((D_HID, D_OUT_PAD)),
            resident2((1, D_OUT_PAD)),
        ],
        out_specs=pl.BlockSpec((tb, D_OUT_PAD), lambda i: (i, 0)),
        compiler_params=cparams,
    )(h2, scale, shift, w3p, b3p)

    return out[:B, :D_OUT]


def init_params(key):
    k1, k2, k3, k4, k5, k6 = jax.random.split(key, 6)

    def linear_init(kw, kb, fan_in, fan_out):
        bound = 1.0 / jnp.sqrt(fan_in)
        w = jax.random.uniform(kw, (fan_in, fan_out), jnp.float32, -bound, bound)
        b = jax.random.uniform(kb, (1, fan_out), jnp.float32, -bound, bound)
        return w, b

    w1, b1 = linear_init(k1, k2, D_IN, D_HID)
    w2, b2 = linear_init(k3, k4, D_HID, D_HID)
    w3, b3 = linear_init(k5, k6, D_HID, D_OUT)
    gamma = jnp.ones((1, D_HID), jnp.float32)   # BatchNorm1d weight
    beta = jnp.zeros((1, D_HID), jnp.float32)   # BatchNorm1d bias
    return (w1, b1, w2, b2, gamma, beta, w3, b3)


def reference_forward(x_nchw, params):
    # Same numerics as the kernel: bf16 matmul operands, f32 accumulation.
    w1, b1, w2, b2, gamma, beta, w3, b3 = params
    x = x_nchw.reshape(x_nchw.shape[0], -1).astype(jnp.bfloat16)
    h = jnp.dot(x, w1.astype(jnp.bfloat16), preferred_element_type=jnp.float32) + b1
    h = jnp.maximum(h, 0.0)
    h = jnp.dot(h.astype(jnp.bfloat16), w2.astype(jnp.bfloat16),
                preferred_element_type=jnp.float32) + b2
    mean = jnp.mean(h, axis=0, keepdims=True)
    var = jnp.mean((h - mean) ** 2, axis=0, keepdims=True)
    h = (h - mean) * jax.lax.rsqrt(var + BN_EPS) * gamma + beta
    h = jnp.maximum(h, 0.0).astype(jnp.bfloat16)
    return jnp.dot(h, w3.astype(jnp.bfloat16),
                   preferred_element_type=jnp.float32) + b3


if __name__ == "__main__":
    key = jax.random.PRNGKey(0)
    kx, kp = jax.random.split(key)

    B = 8
    x = jax.random.normal(kx, (B, 1, 28, 28), jnp.float32)  # NCHW, 1*28*28 = 784
    params = init_params(kp)

    out = mlp_forward(x, params)
    out = jax.block_until_ready(out)

    ref = reference_forward(x, params)
    assert out.shape == (B, 10)
    assert jnp.allclose(out, ref, atol=5e-3, rtol=5e-3), float(jnp.max(jnp.abs(out - ref)))

    print("KERNEL_OK")
</pallas_src>

<mosaic_0001>
module attributes {stable_mosaic.version = 11 : i64} {
  func.func @kernel(%arg0: i32, %arg1: memref<8x784xbf16, #tpu.memory_space<vmem>>, %arg2: memref<784x512xbf16, #tpu.memory_space<vmem>>, %arg3: memref<1x512xf32, #tpu.memory_space<vmem>>, %arg4: memref<512x512xbf16, #tpu.memory_space<vmem>>, %arg5: memref<1x512xf32, #tpu.memory_space<vmem>>, %arg6: memref<8x512xf32, #tpu.memory_space<vmem>>, %arg7: memref<1x2x512xf32, #tpu.memory_space<vmem>>) attributes {dimension_semantics = [#tpu.dimension_semantics<parallel>], iteration_bounds = array<i64: 1>, scalar_prefetch = 0 : i64, scratch_operands = 0 : i64, tpu.core_type = #tpu.core_type<tc>, window_params = [{transform_indices = @transform_0, window_bounds = array<i64: 8, 784>}, {pipeline_mode = #tpu.pipeline_mode<synchronous>, transform_indices = @transform_1, window_bounds = array<i64: 784, 512>}, {pipeline_mode = #tpu.pipeline_mode<synchronous>, transform_indices = @transform_2, window_bounds = array<i64: 1, 512>}, {pipeline_mode = #tpu.pipeline_mode<synchronous>, transform_indices = @transform_3, window_bounds = array<i64: 512, 512>}, {pipeline_mode = #tpu.pipeline_mode<synchronous>, transform_indices = @transform_4, window_bounds = array<i64: 1, 512>}, {transform_indices = @transform_5, window_bounds = array<i64: 8, 512>}, {transform_indices = @transform_6, window_bounds = array<i64: 1, 2, 512>}]} {
    %c0 = arith.constant 0 : index
    %c0_0 = arith.constant 0 : index
    %0 = vector.load %arg1[%c0, %c0_0] : memref<8x784xbf16, #tpu.memory_space<vmem>>, vector<8x784xbf16>
    %c0_1 = arith.constant 0 : index
    %c0_2 = arith.constant 0 : index
    %1 = vector.load %arg2[%c0_1, %c0_2] : memref<784x512xbf16, #tpu.memory_space<vmem>>, vector<784x512xbf16>
    %cst = arith.constant dense<0.000000e+00> : vector<8x512xf32>
    %2 = tpu.matmul %0, %1, %cst {dimension_numbers = #tpu.dot_dimension_numbers<[1], [0], [0], [1], [0, 0, 1, 1], [], []>} : vector<8x784xbf16>, vector<784x512xbf16>, vector<8x512xf32> -> vector<8x512xf32>
    %c0_3 = arith.constant 0 : index
    %c0_4 = arith.constant 0 : index
    %3 = vector.load %arg3[%c0_3, %c0_4] : memref<1x512xf32, #tpu.memory_space<vmem>>, vector<1x512xf32>
    %4 = vector.broadcast %3 : vector<1x512xf32> to vector<8x512xf32>
    %5 = arith.addf %2, %4 : vector<8x512xf32>
    %cst_5 = arith.constant 0.000000e+00 : f32
    %6 = vector.broadcast %cst_5 : f32 to vector<8x512xf32>
    %7 = arith.maximumf %5, %6 : vector<8x512xf32>
    %8 = arith.truncf %7 : vector<8x512xf32> to vector<8x512xbf16>
    %c0_6 = arith.constant 0 : index
    %c0_7 = arith.constant 0 : index
    %9 = vector.load %arg4[%c0_6, %c0_7] : memref<512x512xbf16, #tpu.memory_space<vmem>>, vector<512x512xbf16>
    %cst_8 = arith.constant dense<0.000000e+00> : vector<8x512xf32>
    %10 = tpu.matmul %8, %9, %cst_8 {dimension_numbers = #tpu.dot_dimension_numbers<[1], [0], [0], [1], [0, 0, 1, 1], [], []>} : vector<8x512xbf16>, vector<512x512xbf16>, vector<8x512xf32> -> vector<8x512xf32>
    %c0_9 = arith.constant 0 : index
    %c0_10 = arith.constant 0 : index
    %11 = vector.load %arg5[%c0_9, %c0_10] : memref<1x512xf32, #tpu.memory_space<vmem>>, vector<1x512xf32>
    %12 = vector.broadcast %11 : vector<1x512xf32> to vector<8x512xf32>
    %13 = arith.addf %10, %12 : vector<8x512xf32>
    %c0_11 = arith.constant 0 : index
    %c0_12 = arith.constant 0 : index
    %14 = vector.load %arg6[%c0_11, %c0_12] : memref<8x512xf32, #tpu.memory_space<vmem>>, vector<8x512xf32>
    tpu.vector_store %arg6[%c0_11, %c0_12], %13 {strides = array<i32>} : memref<8x512xf32, #tpu.memory_space<vmem>>, vector<8x512xf32>,
    %cst_13 = arith.constant dense<0.000000e+00> : vector<512xf32>
    %15 = vector.multi_reduction <add>, %13, %cst_13 [0] : vector<8x512xf32> to vector<512xf32>
    %16 = vector.shape_cast %15 : vector<512xf32> to vector<1x512xf32>
    %17 = arith.mulf %13, %13 : vector<8x512xf32>
    %cst_14 = arith.constant dense<0.000000e+00> : vector<512xf32>
    %18 = vector.multi_reduction <add>, %17, %cst_14 [0] : vector<8x512xf32> to vector<512xf32>
    %19 = vector.shape_cast %18 : vector<512xf32> to vector<1x512xf32>
    %20 = tpu.concatenate %16, %19 in 0 : vector<1x512xf32>, vector<1x512xf32> -> vector<2x512xf32>
    %21 = vector.shape_cast %20 : vector<2x512xf32> to vector<1x2x512xf32>
    %c0_15 = arith.constant 0 : index
    %c0_16 = arith.constant 0 : index
    %c0_17 = arith.constant 0 : index
    %22 = vector.load %arg7[%c0_15, %c0_16, %c0_17] : memref<1x2x512xf32, #tpu.memory_space<vmem>>, vector<1x2x512xf32>
    tpu.vector_store %arg7[%c0_15, %c0_16, %c0_17], %21 {strides = array<i32>} : memref<1x2x512xf32, #tpu.memory_space<vmem>>, vector<1x2x512xf32>,
    return
  }
  func.func @transform_0(%arg0: i32) -> (i32, i32) {
    %c0_i32 = arith.constant 0 : i32
    %c0_i32_0 = arith.constant 0 : i32
    return %arg0, %c0_i32 : i32, i32
  }
  func.func @transform_1(%arg0: i32) -> (i32, i32) {
    %c0_i32 = arith.constant 0 : i32
    %c0_i32_0 = arith.constant 0 : i32
    %c0_i32_1 = arith.constant 0 : i32
    return %c0_i32, %c0_i32_0 : i32, i32
  }
  func.func @transform_2(%arg0: i32) -> (i32, i32) {
    %c0_i32 = arith.constant 0 : i32
    %c0_i32_0 = arith.constant 0 : i32
    %c0_i32_1 = arith.constant 0 : i32
    return %c0_i32, %c0_i32_0 : i32, i32
  }
  func.func @transform_3(%arg0: i32) -> (i32, i32) {
    %c0_i32 = arith.constant 0 : i32
    %c0_i32_0 = arith.constant 0 : i32
    %c0_i32_1 = arith.constant 0 : i32
    return %c0_i32, %c0_i32_0 : i32, i32
  }
  func.func @transform_4(%arg0: i32) -> (i32, i32) {
    %c0_i32 = arith.constant 0 : i32
    %c0_i32_0 = arith.constant 0 : i32
    %c0_i32_1 = arith.constant 0 : i32
    return %c0_i32, %c0_i32_0 : i32, i32
  }
  func.func @transform_5(%arg0: i32) -> (i32, i32) {
    %c0_i32 = arith.constant 0 : i32
    %c0_i32_0 = arith.constant 0 : i32
    return %arg0, %c0_i32 : i32, i32
  }
  func.func @transform_6(%arg0: i32) -> (i32, i32, i32) {
    %c0_i32 = arith.constant 0 : i32
    %c0_i32_0 = arith.constant 0 : i32
    %c0_i32_1 = arith.constant 0 : i32
    return %arg0, %c0_i32, %c0_i32_0 : i32, i32, i32
  }
}

</mosaic_0001>

<bundles_post_ra>
// kernel: tpu_custom_call.1
= control target key start
LH: loop header
LB: loop body
LE: loop exit
PB: predicated region body
PF: predicated region fallthrough
CT: control target
= control target key end

     0   :  { %12 = vsyncpa [#allocation3], 0  ;;  %s4782_s0 = inlined_call_operand.hbm [shape: bf16[8,784], index: 0, kind: input, shape index: {}]   ;;  %s4783_s1 = inlined_call_operand.hbm [shape: bf16[784,512], index: 1, kind: input, shape index: {}]   ;;  %s4784_s2 = inlined_call_operand.hbm [shape: f32[1,512], index: 2, kind: input, shape index: {}]   ;;  %s4785_s3 = inlined_call_operand.hbm [shape: bf16[512,512], index: 3, kind: input, shape index: {}]   ;;  %s4786_s4 = inlined_call_operand.hbm [shape: f32[1,512], index: 4, kind: input, shape index: {}]   ;;  %s4787_s5 = inlined_call_operand.hbm [shape: f32[8,512], index: 5, kind: output, shape index: {0}]   ;;  %s4788_s6 = inlined_call_operand.hbm [shape: f32[1,2,512], index: 6, kind: output, shape index: {1}]  }
   0x1   :  { %13 = vsyncpa [#allocation6], 0 }
   0x2   :  { %14 = vsyncpa [#allocation9], 0 }
   0x3   :  { %15 = vsyncpa [#allocation4], 0  ;;  %s32_s23 = sshll.u32 %s4783_s1, 4  ;;  %s33_s23 = int_to_ptr.hbm [resolvable:$true] %s32_s23 }
   0x4   :  { %16 = vsyncpa [#allocation13], 0  ;;  %s4595_s24 = smov [#allocation5]   ;;  %s56_s28 = sshll.u32 %s4785_s3, 4  ;;  %s57_s28 = int_to_ptr.hbm [resolvable:$true] %s56_s28 }
   0x5   :  { %s34_s25 = sshll.u32 %s4595_s24, 4  ;;  %s4596_s29 = smov 256   ;;  %s35_s25 = int_to_ptr.vmem [resolvable:$true] %s34_s25 }
   0x6   :  { %s4597_s30 = smov 16   ;;  %s4598_s7 = smov [#allocation8]  }
   0x7   :  { %40 = dma.hbm_to_vmem [thread:$0]  %s33_s23, 25088, %s35_s25, [#allocation6], %s4596_s29, %s4596_s29, %s4597_s30  }
   0x8   :  { %s58_s8 = sshll.u32 %s4598_s7, 4  ;;  %s22_s11 = sshll.u32 %s4782_s0, 4  ;;  %s59_s8 = int_to_ptr.vmem [resolvable:$true] %s58_s8  ;;  %s23_s11 = int_to_ptr.hbm [resolvable:$true] %s22_s11 }
   0x9   :  { %64 = dma.hbm_to_vmem [thread:$0]  %s57_s28, 16384, %s59_s8, [#allocation9], %s4596_s29, %s4596_s29, %s4597_s30  }
   0xa   :  { %s46_s13 = sshll.u32 %s4784_s2, 4  ;;  %s4599_s14 = smov [#allocation2]   ;;  %s47_s13 = int_to_ptr.hbm [resolvable:$true] %s46_s13 }
   0xb   :  { %s24_s15 = sshll.u32 %s4599_s14, 4  ;;  %s4600_s3 = smov [#allocation7]   ;;  %s25_s15 = int_to_ptr.vmem [resolvable:$true] %s24_s15 }
   0xc   :  { %27 = dma.hbm_to_vmem [thread:$0]  %s23_s11, 448, %s25_s15, [#allocation3]  }
   0xd   :  { %s48_s16 = sshll.u32 %s4600_s3, 4  ;;  %s70_s19 = sshll.u32 %s4786_s4, 4  ;;  %s49_s16 = int_to_ptr.vmem [resolvable:$true] %s48_s16  ;;  %s71_s19 = int_to_ptr.hbm [resolvable:$true] %s70_s19 }
   0xe   :  { %51 = dma.hbm_to_vmem [thread:$0]  %s47_s13, 64, %s49_s16, [#allocation6]  }
   0xf   :  { %s4601_s0 = smov [#allocation10]  }
  0x10   :  { %s72_s20 = sshll.u32 %s4601_s0, 4  ;;  %s73_s20 = int_to_ptr.vmem [resolvable:$true] %s72_s20 }
  0x11   :  { %75 = dma.hbm_to_vmem [thread:$0]  %s71_s19, 64, %s73_s20, [#allocation9]  }
  0x12   :  { %4585 = dma.done.wait [#allocation3], 448  }
  0x13   :  { %4586 = vsyncadd [#allocation3], 4294966848 }
  0x14   :  { %4587 = dma.done.wait [#allocation6], 25152  }
  0x15   :  { %4588 = vsyncadd [#allocation6], 4294942144 }
  0x16   :  { %4589 = dma.done.wait [#allocation9], 16448  }
  0x17   :  { %4590 = vsyncadd [#allocation9], 4294950848  ;;  %v2898_v0 = vld [vmem:[#allocation5 + $0xe0] sm:$0xf]  ;;  %v4114_v1 = vld [vmem:[#allocation5 + $0xec] sm:$0xf0] }
  0x18   :  { %v3026_v2 = vld [vmem:[#allocation5 + $0x1e0] sm:$0xf]  ;;  %v2899_v3 = vor.u32 %v4114_v1, %v2898_v0  ;;  %v4146_v4 = vld [vmem:[#allocation5 + $0x1ec] sm:$0xf0]  ;;  %vm1311_vm0 = vcmask 130048   ;;  %vm2729_vm1 = vcmask 1040384  }
  0x19   :  { %v3154_v5 = vld [vmem:[#allocation5 + $0x2e0] sm:$0xf]  ;;  %v4178_v6 = vld [vmem:[#allocation5 + $0x2ec] sm:$0xf0]  ;;  %v3027_v7 = vor.u32 %v4146_v4, %v3026_v2  ;;  %vm2741_vm2 = vcmask 1041408   ;;  %s4602_s2 = smov [#allocation11]  }
  0x1a   :  { %v3155_v8 = vor.u32 %v4178_v6, %v3154_v5  ;;  %v3282_v9 = vld [vmem:[#allocation5 + $0x3e0] sm:$0xf]  ;;  %v4210_v10 = vld [vmem:[#allocation5 + $0x3ec] sm:$0xf0]  ;;  %1315 = vmatpush.bf16.msra.mxu0 %v2899_v3  ;;  %s2754_s4 = sshll.u32 %s4602_s2, 4  ;;  %s2756_s23 = sshll.u32 %s4787_s5, 4  ;;  %s2755_s4 = int_to_ptr.vmem [resolvable:$true] %s2754_s4  ;;  %s2757_s23 = int_to_ptr.hbm [resolvable:$true] %s2756_s23 }
  0x1b   :  { %v2882_v11 = vld [vmem:[#allocation5 + $0xc0] sm:$0xf]  ;;  %v3283_v12 = vor.u32 %v4210_v10, %v3282_v9  ;;  %v4110_v13 = vld [vmem:[#allocation5 + $0xcc] sm:$0xf0]  ;;  %1328 = vmatpush.bf16.msra.mxu1 %v3027_v7  ;;  %vm2743_vm3 = vcmask 1045508   ;;  %s4603_s5 = smov [#allocation12]  }
  0x1c   :  { %v3010_v14 = vld [vmem:[#allocation5 + $0x1c0] sm:$0xf]  ;;  %v4142_v15 = vld [vmem:[#allocation5 + $0x1cc] sm:$0xf0]  ;;  %1341 = vmatpush.bf16.msra.mxu2 %v3155_v8  ;;  %v2883_v16 = vor.u32 %v4110_v13, %v2882_v11  ;;  %s2765_s24 = sshll.u32 %s4603_s5, 4  ;;  %s2767_s27 = sshll.u32 %s4788_s6, 4  ;;  %s2766_s24 = int_to_ptr.vmem [resolvable:$true] %s2765_s24  ;;  %s2768_s27 = int_to_ptr.hbm [resolvable:$true] %s2767_s27 }
  0x1d   :  { %v3011_v17 = vor.u32 %v4142_v15, %v3010_v14  ;;  %v3138_v18 = vld [vmem:[#allocation5 + $0x2c0] sm:$0xf]  ;;  %v4174_v19 = vld [vmem:[#allocation5 + $0x2cc] sm:$0xf0]  ;;  %1354 = vmatpush.bf16.msra.mxu3 %v3283_v12  ;;  %vm2745_vm4 = vcmask 1043456  }
  0x1e   :  { %v3266_v20 = vld [vmem:[#allocation5 + $0x3c0] sm:$0xf]  ;;  %v3139_v21 = vor.u32 %v4174_v19, %v3138_v18  ;;  %v4206_v22 = vld [vmem:[#allocation5 + $0x3cc] sm:$0xf0]  ;;  %1316 = vmatpush.bf16.msra.mxu0 %v2883_v16 }
  0x1f   :  { %v2866_v23 = vld [vmem:[#allocation5 + $0xa0] sm:$0xf]  ;;  %v4106_v24 = vld [vmem:[#allocation5 + $0xac] sm:$0xf0]  ;;  %v3267_v25 = vor.u32 %v4206_v22, %v3266_v20  ;;  %1329 = vmatpush.bf16.msra.mxu1 %v3011_v17 }
  0x20   :  { %v2994_v26 = vld [vmem:[#allocation5 + $0x1a0] sm:$0xf]  ;;  %v4138_v27 = vld [vmem:[#allocation5 + $0x1ac] sm:$0xf0]  ;;  %v2867_v29 = vor.u32 %v4106_v24, %v2866_v23  ;;  %1342 = vmatpush.bf16.msra.mxu2 %v3139_v21 }
  0x21   :  { %v3122_v28 = vld [vmem:[#allocation5 + $0x2a0] sm:$0xf]  ;;  %v4170_v30 = vld [vmem:[#allocation5 + $0x2ac] sm:$0xf0]  ;;  %v2995_v33 = vor.u32 %v4138_v27, %v2994_v26  ;;  %1355 = vmatpush.bf16.msra.mxu3 %v3267_v25 }
  0x22   :  { %v3250_v31 = vld [vmem:[#allocation5 + $0x3a0] sm:$0xf]  ;;  %v4202_v32 = vld [vmem:[#allocation5 + $0x3ac] sm:$0xf0]  ;;  %v3123_v34 = vor.u32 %v4170_v30, %v3122_v28  ;;  %1317 = vmatpush.bf16.msra.mxu0 %v2867_v29 }
  0x23   :  { %v2850_v35 = vld [vmem:[#allocation5 + $0x80] sm:$0xf]  ;;  %v4102_v36 = vld [vmem:[#allocation5 + $0x8c] sm:$0xf0]  ;;  %v3251_v38 = vor.u32 %v4202_v32, %v3250_v31  ;;  %1330 = vmatpush.bf16.msra.mxu1 %v2995_v33 }
  0x24   :  { %v2978_v37 = vld [vmem:[#allocation5 + $0x180] sm:$0xf]  ;;  %v4134_v39 = vld [vmem:[#allocation5 + $0x18c] sm:$0xf0]  ;;  %v2851_v44 = vor.u32 %v4102_v36, %v2850_v35  ;;  %1343 = vmatpush.bf16.msra.mxu2 %v3123_v34  ;;  %v4112_v34 = vld [vmem:[#allocation5 + $0xe4] sm:$0xf] }
  0x25   :  { %v3106_v40 = vld [vmem:[#allocation5 + $0x280] sm:$0xf]  ;;  %v4166_v41 = vld [vmem:[#allocation5 + $0x28c] sm:$0xf0]  ;;  %v2979_v45 = vor.u32 %v4134_v39, %v2978_v37  ;;  %1356 = vmatpush.bf16.msra.mxu3 %v3251_v38  ;;  %v2900_v35 = vld [vmem:[#allocation5 + $0xf0] sm:$0xf0] }
  0x26   :  { %v3234_v42 = vld [vmem:[#allocation5 + $0x380] sm:$0xf]  ;;  %v4198_v43 = vld [vmem:[#allocation5 + $0x38c] sm:$0xf0]  ;;  %v3107_v46 = vor.u32 %v4166_v41, %v3106_v40  ;;  %1318 = vmatpush.bf16.msra.mxu0 %v2851_v44  ;;  %v97_v37 = vld [vmem:[#allocation2] sm:$0xff] }
  0x27   :  { %v2834_v47 = vld [vmem:[#allocation5 + $0x60] sm:$0xf]  ;;  %v4098_v48 = vld [vmem:[#allocation5 + $0x6c] sm:$0xf0]  ;;  %v3235_v50 = vor.u32 %v4198_v43, %v3234_v42  ;;  %1331 = vmatpush.bf16.msra.mxu1 %v2979_v45  ;;  %v311_v41 = vunpack.c.l.b16 %v97_v37 }
  0x28   :  { %v2962_v49 = vld [vmem:[#allocation5 + $0x160] sm:$0xf]  ;;  %v4130_v51 = vld [vmem:[#allocation5 + $0x16c] sm:$0xf0]  ;;  %v2835_v56 = vor.u32 %v4098_v48, %v2834_v47  ;;  %1344 = vmatpush.bf16.msra.mxu2 %v3107_v46  ;;  %v4144_v46 = vld [vmem:[#allocation5 + $0x1e4] sm:$0xf] }
  0x29   :  { %v3090_v52 = vld [vmem:[#allocation5 + $0x260] sm:$0xf]  ;;  %v4162_v53 = vld [vmem:[#allocation5 + $0x26c] sm:$0xf0]  ;;  %v2963_v57 = vor.u32 %v4130_v51, %v2962_v49  ;;  %1357 = vmatpush.bf16.msra.mxu3 %v3235_v50  ;;  %v3028_v47 = vld [vmem:[#allocation5 + $0x1f0] sm:$0xf0]  ;;  %v2903_v49 = vor.u32 %v4112_v34, %v2900_v35 }
  0x2a   :  { %v3218_v54 = vld [vmem:[#allocation5 + $0x360] sm:$0xf]  ;;  %v4194_v55 = vld [vmem:[#allocation5 + $0x36c] sm:$0xf0]  ;;  %v3091_v58 = vor.u32 %v4162_v53, %v3090_v52  ;;  %1319 = vmatpush.bf16.msra.mxu0 %v2835_v56  ;;  %v2884_v56 = vld [vmem:[#allocation5 + $0xd0] sm:$0xf0] }
  0x2b   :  { %v2818_v59 = vld [vmem:[#allocation5 + $0x40] sm:$0xf]  ;;  %v4094_v60 = vld [vmem:[#allocation5 + $0x4c] sm:$0xf0]  ;;  %v3219_v62 = vor.u32 %v4194_v55, %v3218_v54  ;;  %1332 = vmatpush.bf16.msra.mxu1 %v2963_v57  ;;  %v4108_v55 = vld [vmem:[#allocation5 + $0xc4] sm:$0xf]  ;;  %v4656_v57 = vpack.c.b16 %v311_v41, %v311_v41 }
  0x2c   :  { %v2946_v61 = vld [vmem:[#allocation5 + $0x140] sm:$0xf]  ;;  %v4126_v63 = vld [vmem:[#allocation5 + $0x14c] sm:$0xf0]  ;;  %v2819_v4 = vor.u32 %v4094_v60, %v2818_v59  ;;  %1345 = vmatpush.bf16.msra.mxu2 %v3091_v58  ;;  %v312_v58 = vunpack.c.h.b16 %v97_v37  ;;  %v2836_v34 = vld [vmem:[#allocation5 + $0x70] sm:$0xf0] }
  0x2d   :  { %v3074_v0 = vld [vmem:[#allocation5 + $0x240] sm:$0xf]  ;;  %v4158_v1 = vld [vmem:[#allocation5 + $0x24c] sm:$0xf0]  ;;  %v2947_v5 = vor.u32 %v4126_v63, %v2946_v61  ;;  %1358 = vmatpush.bf16.msra.mxu3 %v3219_v62  ;;  %v3031_v61 = vor.u32 %v4144_v46, %v3028_v47  ;;  %v4140_v63 = vld [vmem:[#allocation5 + $0x1c4] sm:$0xf] }
  0x2e   :  { %v3202_v2 = vld [vmem:[#allocation5 + $0x340] sm:$0xf]  ;;  %v4190_v3 = vld [vmem:[#allocation5 + $0x34c] sm:$0xf0]  ;;  %v3075_v6 = vor.u32 %v4158_v1, %v3074_v0  ;;  %1320 = vmatpush.bf16.msra.mxu0 %v2819_v4  ;;  %v3012_v0 = vld [vmem:[#allocation5 + $0x1d0] sm:$0xf0] }
  0x2f   :  { %v2802_v7 = vld [vmem:[#allocation5 + $0x20] sm:$0xf]  ;;  %v4090_v8 = vld [vmem:[#allocation5 + $0x2c] sm:$0xf0]  ;;  %v3203_v10 = vor.u32 %v4190_v3, %v3202_v2  ;;  %1333 = vmatpush.bf16.msra.mxu1 %v2947_v5  ;;  %v2887_v2 = vor.u32 %v4108_v55, %v2884_v56  ;;  %v4092_v46 = vld [vmem:[#allocation5 + $0x44] sm:$0xf] }
  0x30   :  { %v2930_v9 = vld [vmem:[#allocation5 + $0x120] sm:$0xf]  ;;  %v4122_v11 = vld [vmem:[#allocation5 + $0x12c] sm:$0xf0]  ;;  %v2803_v17 = vor.u32 %v4090_v8, %v2802_v7  ;;  %1346 = vmatpush.bf16.msra.mxu2 %v3075_v6  ;;  %v4104_v7 = vld [vmem:[#allocation5 + $0xa4] sm:$0xf] }
  0x31   :  { %v3058_v12 = vld [vmem:[#allocation5 + $0x220] sm:$0xf]  ;;  %v4154_v13 = vld [vmem:[#allocation5 + $0x22c] sm:$0xf0]  ;;  %v2931_v21 = vor.u32 %v4122_v11, %v2930_v9  ;;  %1359 = vmatpush.bf16.msra.mxu3 %v3203_v10  ;;  %v2868_v8 = vld [vmem:[#allocation5 + $0xb0] sm:$0xf0]  ;;  %v4662_v9 = vpack.c.b16 %v312_v58, %v312_v58  ;;  %v3015_v10 = vor.u32 %v4140_v63, %v3012_v0 }
  0x32   :  { %v3186_v14 = vld [vmem:[#allocation5 + $0x320] sm:$0xf]  ;;  %v4186_v15 = vld [vmem:[#allocation5 + $0x32c] sm:$0xf0]  ;;  %v3059_v22 = vor.u32 %v4154_v13, %v3058_v12  ;;  %1321 = vmatpush.bf16.msra.mxu0 %v2803_v17  ;;  %v4136_v12 = vld [vmem:[#allocation5 + $0x1a4] sm:$0xf] }
  0x33   :  { %v2786_v16 = vld [vmem:[#allocation5] sm:$0xf]  ;;  %v4086_v18 = vld [vmem:[#allocation5 + $0xc] sm:$0xf0]  ;;  %v3187_v26 = vor.u32 %v4186_v15, %v3186_v14  ;;  %1334 = vmatpush.bf16.msra.mxu1 %v2931_v21  ;;  %v2996_v13 = vld [vmem:[#allocation5 + $0x1b0] sm:$0xf0]  ;;  %v2871_v15 = vor.u32 %v4104_v7, %v2868_v8 }
  0x34   :  { %v2914_v19 = vld [vmem:[#allocation5 + $0x100] sm:$0xf]  ;;  %v4118_v20 = vld [vmem:[#allocation5 + $0x10c] sm:$0xf0]  ;;  %v2787_v33 = vor.u32 %v4086_v18, %v2786_v16  ;;  %1347 = vmatpush.bf16.msra.mxu2 %v3059_v22  ;;  %v2852_v21 = vld [vmem:[#allocation5 + $0x90] sm:$0xf0] }
  0x35   :  { %v3042_v23 = vld [vmem:[#allocation5 + $0x200] sm:$0xf]  ;;  %v4150_v24 = vld [vmem:[#allocation5 + $0x20c] sm:$0xf0]  ;;  %v2915_v38 = vor.u32 %v4118_v20, %v2914_v19  ;;  %1360 = vmatpush.bf16.msra.mxu3 %v3187_v26  ;;  %v4100_v20 = vld [vmem:[#allocation5 + $0x84] sm:$0xf] }
  0x36   :  { %v98_v25 = vld [vmem:[#allocation2 + $0x8] sm:$0xff]  ;;  %v3170_v27 = vld [vmem:[#allocation5 + $0x300] sm:$0xf]  ;;  %v3043_v39 = vor.u32 %v4150_v24, %v3042_v23  ;;  %1322 = vmatpush.bf16.msra.mxu0 %v2787_v33  ;;  %v100_v22 = vld [vmem:[#allocation2 + $0x18] sm:$0xf]  ;;  %v2999_v23 = vor.u32 %v4136_v12, %v2996_v13 }
  0x37   :  { %v4182_v28 = vld [vmem:[#allocation5 + $0x30c] sm:$0xf0]  ;;  %v3410_v29 = vld [vmem:[#allocation5 + $0x4e0] sm:$0xf]  ;;  %v313_v36 = vunpack.c.l.b16 %v98_v25  ;;  %v314_v42 = vunpack.c.h.b16 %v98_v25  ;;  %1335 = vmatpush.bf16.msra.mxu1 %v2915_v38  ;;  %v4132_v25 = vld [vmem:[#allocation5 + $0x184] sm:$0xf]  ;;  %v317_v35 = vunpack.c.l.b16 %v100_v22 }
  0x38   :  { %v4242_v30 = vld [vmem:[#allocation5 + $0x4ec] sm:$0xf0]  ;;  %v3538_v31 = vld [vmem:[#allocation5 + $0x5e0] sm:$0xf]  ;;  %v3171_v43 = vor.u32 %v4182_v28, %v3170_v27  ;;  %1348 = vmatpush.bf16.msra.mxu2 %v3043_v39  ;;  %v2980_v26 = vld [vmem:[#allocation5 + $0x190] sm:$0xf0]  ;;  %v2855_v28 = vor.u32 %v4100_v20, %v2852_v21 }
  0x39   :  { %v4274_v32 = vld [vmem:[#allocation5 + $0x5ec] sm:$0xf0]  ;;  %v3554_v40 = vld [vmem:[#allocation5 + $0x600] sm:$0xf]  ;;  %v3411_v44 = vor.u32 %v4242_v30, %v3410_v29  ;;  %v4654_v53 = vpack.c.b16 %v313_v36, %v313_v36  ;;  %v4658_v60 = vpack.c.b16 %v314_v42, %v314_v42  ;;  %1323 = vmatmul.bf16.vlgmr.msra.gmra.mxu0 %v4656_v57  ;;  %v4096_v33 = vld [vmem:[#allocation5 + $0x64] sm:$0xf]  ;;  %v2983_v36 = vor.u32 %v4132_v25, %v2980_v26 }
  0x3a   :  { %v4278_v45 = vld [vmem:[#allocation5 + $0x60c] sm:$0xf0]  ;;  %v3539_v48 = vor.u32 %v4274_v32, %v3538_v31  ;;  %v3394_v50 = vld [vmem:[#allocation5 + $0x4c0] sm:$0xf]  ;;  %1361 = vmatpush.bf16.msra.mxu3 %v3171_v43  ;;  %1336 = vmatmul.bf16.vlgmr.msra.gmra.mxu1 %v4662_v9  ;;  %v4128_v38 = vld [vmem:[#allocation5 + $0x164] sm:$0xf]  ;;  %v2839_v41 = vor.u32 %v4096_v33, %v2836_v34 }
  0x3b   :  { %v4238_v51 = vld [vmem:[#allocation5 + $0x4cc] sm:$0xf0]  ;;  %v3522_v52 = vld [vmem:[#allocation5 + $0x5c0] sm:$0xf]  ;;  %v3555_v59 = vor.u32 %v4278_v45, %v3554_v40  ;;  %1367 = vmatpush.bf16.msrb.mxu0 %v3411_v44  ;;  %1349 = vmatmul.bf16.vlgmr.msra.gmra.mxu2 %v4654_v53  ;;  %v2964_v39 = vld [vmem:[#allocation5 + $0x170] sm:$0xf0] }
  0x3c   :  { %v4270_v54 = vld [vmem:[#allocation5 + $0x5cc] sm:$0xf0]  ;;  %v3395_v62 = vor.u32 %v4238_v51, %v3394_v50  ;;  %1380 = vmatpush.bf16.msrb.mxu1 %v3539_v48  ;;  %v3378_v3 = vld [vmem:[#allocation5 + $0x4a0] sm:$0xf]  ;;  %v2820_v47 = vld [vmem:[#allocation5 + $0x50] sm:$0xf0]  ;;  %v4666_v48 = vpack.c.b16 %v317_v35, %v317_v35 }
  0x3d   :  { %v3523_v1 = vor.u32 %v4270_v54, %v3522_v52  ;;  %v4234_v4 = vld [vmem:[#allocation5 + $0x4ac] sm:$0xf0]  ;;  %v3506_v5 = vld [vmem:[#allocation5 + $0x5a0] sm:$0xf]  ;;  %1400 = vmatpush.bf16.msrb.mxu2 %v3555_v59  ;;  %1362 = vmatmul.bf16.vlgmr.msra.gmra.mxu3 %v4658_v60  ;;  %v4124_v51 = vld [vmem:[#allocation5 + $0x144] sm:$0xf]  ;;  %v2823_v55 = vor.u32 %v4092_v46, %v2820_v47 }
  0x3e   :  { %1406 = vmatpush.bf16.msrb.mxu3 %v2903_v49  ;;  %v4266_v6 = vld [vmem:[#allocation5 + $0x5ac] sm:$0xf0]  ;;  %v3379_v11 = vor.u32 %v4234_v4, %v3378_v3  ;;  %v3362_v16 = vld [vmem:[#allocation5 + $0x480] sm:$0xf]  ;;  %v2967_v49 = vor.u32 %v4128_v38, %v2964_v39  ;;  %v2948_v52 = vld [vmem:[#allocation5 + $0x150] sm:$0xf0] }
  0x3f   :  { %1368 = vmatpush.bf16.msrb.mxu0 %v3395_v62  ;;  %v3507_v14 = vor.u32 %v4266_v6, %v3506_v5  ;;  %v4230_v17 = vld [vmem:[#allocation5 + $0x48c] sm:$0xf0]  ;;  %v3490_v18 = vld [vmem:[#allocation5 + $0x580] sm:$0xf]  ;;  %v4088_v62 = vld [vmem:[#allocation5 + $0x24] sm:$0xf] }
  0x40   :  { %1381 = vmatpush.bf16.msrb.mxu1 %v3523_v1  ;;  %v4262_v19 = vld [vmem:[#allocation5 + $0x58c] sm:$0xf0]  ;;  %v3363_v24 = vor.u32 %v4230_v17, %v3362_v16  ;;  %v3346_v29 = vld [vmem:[#allocation5 + $0x460] sm:$0xf]  ;;  %v2804_v63 = vld [vmem:[#allocation5 + $0x30] sm:$0xf0]  ;;  %v2951_v1 = vor.u32 %v4124_v51, %v2948_v52 }
  0x41   :  { %1419 = vmatpush.bf16.msra.mxu2 %v3031_v61  ;;  %v3491_v27 = vor.u32 %v4262_v19, %v3490_v18  ;;  %v4226_v30 = vld [vmem:[#allocation5 + $0x46c] sm:$0xf0]  ;;  %v3474_v31 = vld [vmem:[#allocation5 + $0x560] sm:$0xf]  ;;  %v4120_v0 = vld [vmem:[#allocation5 + $0x124] sm:$0xf]  ;;  %v2807_v7 = vor.u32 %v4088_v62, %v2804_v63 }
  0x42   :  { %1407 = vmatpush.bf16.msrb.mxu3 %v2887_v2  ;;  %v4258_v32 = vld [vmem:[#allocation5 + $0x56c] sm:$0xf0]  ;;  %v3347_v37 = vor.u32 %v4226_v30, %v3346_v29  ;;  %v3330_v42 = vld [vmem:[#allocation5 + $0x440] sm:$0xf]  ;;  %v2932_v3 = vld [vmem:[#allocation5 + $0x130] sm:$0xf0] }
  0x43   :  { %1369 = vmatpush.bf16.msrb.mxu0 %v3379_v11  ;;  %v3475_v40 = vor.u32 %v4258_v32, %v3474_v31  ;;  %v4222_v43 = vld [vmem:[#allocation5 + $0x44c] sm:$0xf0]  ;;  %v3458_v44 = vld [vmem:[#allocation5 + $0x540] sm:$0xf]  ;;  %v99_v5 = vld [vmem:[#allocation2 + $0x10] sm:$0xff]  ;;  %v2935_v19 = vor.u32 %v4120_v0, %v2932_v3 }
  0x44   :  { %1382 = vmatpush.bf16.msrb.mxu1 %v3507_v14  ;;  %v4254_v45 = vld [vmem:[#allocation5 + $0x54c] sm:$0xf0]  ;;  %v3331_v50 = vor.u32 %v4222_v43, %v3330_v42  ;;  %v3314_v56 = vld [vmem:[#allocation5 + $0x420] sm:$0xf]  ;;  %v4084_v12 = vld [vmem:[#allocation5 + $0x4] sm:$0xf]  ;;  %v315_v18 = vunpack.c.l.b16 %v99_v5 }
  0x45   :  { %1420 = vmatpush.bf16.msra.mxu2 %v3015_v10  ;;  %v3459_v54 = vor.u32 %v4254_v45, %v3458_v44  ;;  %v4218_v58 = vld [vmem:[#allocation5 + $0x42c] sm:$0xf0]  ;;  %v3442_v59 = vld [vmem:[#allocation5 + $0x520] sm:$0xf]  ;;  %v2788_v13 = vld [vmem:[#allocation5 + $0x10] sm:$0xf0] }
  0x46   :  { %1408 = vmatpush.bf16.msrb.mxu3 %v2871_v15  ;;  %v4250_v61 = vld [vmem:[#allocation5 + $0x52c] sm:$0xf0]  ;;  %v3315_v2 = vor.u32 %v4218_v58, %v3314_v56  ;;  %v3298_v4 = vld [vmem:[#allocation5 + $0x400] sm:$0xf]  ;;  %v4176_v14 = vld [vmem:[#allocation5 + $0x2e4] sm:$0xf]  ;;  %v2791_v25 = vor.u32 %v4084_v12, %v2788_v13  ;;  %v4670_v34 = vpack.c.b16 %v315_v18, %v315_v18 }
  0x47   :  { %1370 = vmatpush.bf16.msrb.mxu0 %v3363_v24  ;;  %v3443_v6 = vor.u32 %v4250_v61, %v3442_v59  ;;  %v4214_v8 = vld [vmem:[#allocation5 + $0x40c] sm:$0xf0]  ;;  %v3426_v10 = vld [vmem:[#allocation5 + $0x500] sm:$0xf]  ;;  %v3156_v15 = vld [vmem:[#allocation5 + $0x2f0] sm:$0xf0] }
  0x48   :  { %1383 = vmatpush.bf16.msrb.mxu1 %v3491_v27  ;;  %v4246_v11 = vld [vmem:[#allocation5 + $0x50c] sm:$0xf0]  ;;  %v4208_v16 = vld [vmem:[#allocation5 + $0x3e4] sm:$0xf]  ;;  %v3284_v17 = vld [vmem:[#allocation5 + $0x3f0] sm:$0xf0]  ;;  %v3299_v20 = vor.u32 %v4214_v8, %v3298_v4 }
  0x49   :  { %1421 = vmatpush.bf16.msra.mxu2 %v2999_v23  ;;  %v4240_v21 = vld [vmem:[#allocation5 + $0x4e4] sm:$0xf]  ;;  %v3412_v22 = vld [vmem:[#allocation5 + $0x4f0] sm:$0xf0]  ;;  %v316_v23 = vunpack.c.h.b16 %v99_v5  ;;  %v3427_v24 = vor.u32 %v4246_v11, %v3426_v10  ;;  %v3287_v29 = vor.u32 %v4208_v16, %v3284_v17 }
  0x4a   :  { %1409 = vmatpush.bf16.msrb.mxu3 %v2855_v28  ;;  %v4116_v26 = vld [vmem:[#allocation5 + $0x104] sm:$0xf]  ;;  %v2916_v27 = vld [vmem:[#allocation5 + $0x110] sm:$0xf0]  ;;  %v3159_v28 = vor.u32 %v4176_v14, %v3156_v15  ;;  %v3415_v33 = vor.u32 %v4240_v21, %v3412_v22 }
  0x4b   :  { %1371 = vmatpush.bf16.msrb.mxu0 %v3347_v37  ;;  %3568 = vmatmul.msk.bf16.vlgmr.msrb.gmra.mxu2 %vm1311_vm0, %v4666_v48  ;;  %v4272_v30 = vld [vmem:[#allocation5 + $0x5e4] sm:$0xf]  ;;  %v3540_v31 = vld [vmem:[#allocation5 + $0x5f0] sm:$0xf0]  ;;  %v2919_v38 = vor.u32 %v4116_v26, %v2916_v27  ;;  %v4672_v39 = vpack.c.b16 %v316_v23, %v316_v23 }
  0x4c   :  { %1384 = vmatpush.bf16.msrb.mxu1 %v3475_v40  ;;  %v4172_v32 = vld [vmem:[#allocation5 + $0x2c4] sm:$0xf]  ;;  %v3140_v35 = vld [vmem:[#allocation5 + $0x2d0] sm:$0xf0]  ;;  %v3543_v42 = vor.u32 %v4272_v30, %v3540_v31 }
  0x4d   :  { %1422 = vmatpush.bf16.msra.mxu2 %v2983_v36  ;;  %v4204_v36 = vld [vmem:[#allocation5 + $0x3c4] sm:$0xf]  ;;  %v3268_v37 = vld [vmem:[#allocation5 + $0x3d0] sm:$0xf0]  ;;  %v3143_v43 = vor.u32 %v4172_v32, %v3140_v35 }
  0x4e   :  { %1410 = vmatpush.bf16.msrb.mxu3 %v2839_v41  ;;  %v4236_v40 = vld [vmem:[#allocation5 + $0x4c4] sm:$0xf]  ;;  %v3396_v41 = vld [vmem:[#allocation5 + $0x4d0] sm:$0xf0]  ;;  %v3271_v44 = vor.u32 %v4204_v36, %v3268_v37 }
  0x4f   :  { %1372 = vmatpush.bf16.msrb.mxu0 %v3331_v50  ;;  %v4268_v45 = vld [vmem:[#allocation5 + $0x5c4] sm:$0xf]  ;;  %v3524_v46 = vld [vmem:[#allocation5 + $0x5d0] sm:$0xf0] }
  0x50   :  { %1385 = vmatpush.bf16.msrb.mxu1 %v3459_v54  ;;  %v4168_v47 = vld [vmem:[#allocation5 + $0x2a4] sm:$0xf]  ;;  %v3124_v50 = vld [vmem:[#allocation5 + $0x2b0] sm:$0xf0]  ;;  %v3527_v56 = vor.u32 %v4268_v45, %v3524_v46 }
  0x51   :  { %1423 = vmatpush.bf16.msra.mxu2 %v2967_v49  ;;  %v3399_v49 = vor.u32 %v4236_v40, %v3396_v41  ;;  %v4200_v51 = vld [vmem:[#allocation5 + $0x3a4] sm:$0xf]  ;;  %v3252_v52 = vld [vmem:[#allocation5 + $0x3b0] sm:$0xf0]  ;;  %v3127_v58 = vor.u32 %v4168_v47, %v3124_v50 }
  0x52   :  { %1411 = vmatpush.bf16.msrb.mxu3 %v2823_v55  ;;  %v4232_v54 = vld [vmem:[#allocation5 + $0x4a4] sm:$0xf]  ;;  %v3380_v55 = vld [vmem:[#allocation5 + $0x4b0] sm:$0xf0]  ;;  %v3255_v59 = vor.u32 %v4200_v51, %v3252_v52 }
  0x53   :  { %1373 = vmatpush.bf16.msrb.mxu0 %v3315_v2  ;;  %v4264_v61 = vld [vmem:[#allocation5 + $0x5a4] sm:$0xf]  ;;  %v3508_v62 = vld [vmem:[#allocation5 + $0x5b0] sm:$0xf0]  ;;  %v3383_v0 = vor.u32 %v4232_v54, %v3380_v55 }
  0x54   :  { %1386 = vmatpush.bf16.msrb.mxu1 %v3443_v6  ;;  %v4164_v63 = vld [vmem:[#allocation5 + $0x284] sm:$0xf]  ;;  %v3236_v3 = vld [vmem:[#allocation5 + $0x390] sm:$0xf0]  ;;  %v3511_v6 = vor.u32 %v4264_v61, %v3508_v62  ;;  %v2906_v61 = vld [vmem:[#allocation5 + $0xe8] sm:$0xf] }
  0x55   :  { %1424 = vmatpush.bf16.msra.mxu2 %v2951_v1  ;;  %v3108_v1 = vld [vmem:[#allocation5 + $0x290] sm:$0xf0]  ;;  %v4196_v2 = vld [vmem:[#allocation5 + $0x384] sm:$0xf]  ;;  %v4115_v62 = vld [vmem:[#allocation5 + $0xf4] sm:$0xf0] }
  0x56   :  { %1412 = vmatpush.bf16.msrb.mxu3 %v2807_v7  ;;  %v4228_v4 = vld [vmem:[#allocation5 + $0x484] sm:$0xf]  ;;  %v3364_v5 = vld [vmem:[#allocation5 + $0x490] sm:$0xf0]  ;;  %v3111_v7 = vor.u32 %v4164_v63, %v3108_v1  ;;  %v3239_v8 = vor.u32 %v4196_v2, %v3236_v3  ;;  %v3162_v2 = vld [vmem:[#allocation5 + $0x2e8] sm:$0xf] }
  0x57   :  { %1374 = vmatpush.bf16.msrb.mxu0 %v3299_v20  ;;  %v4260_v10 = vld [vmem:[#allocation5 + $0x584] sm:$0xf]  ;;  %v3492_v11 = vld [vmem:[#allocation5 + $0x590] sm:$0xf0]  ;;  %v3367_v13 = vor.u32 %v4228_v4, %v3364_v5  ;;  %v4179_v3 = vld [vmem:[#allocation5 + $0x2f4] sm:$0xf0] }
  0x58   :  { %1387 = vmatpush.bf16.msrb.mxu1 %v3427_v24  ;;  %v4160_v12 = vld [vmem:[#allocation5 + $0x264] sm:$0xf]  ;;  %v3092_v14 = vld [vmem:[#allocation5 + $0x270] sm:$0xf0] }
  0x59   :  { %1425 = vmatpush.bf16.msra.mxu2 %v2935_v19  ;;  %v4192_v15 = vld [vmem:[#allocation5 + $0x364] sm:$0xf]  ;;  %v3220_v16 = vld [vmem:[#allocation5 + $0x370] sm:$0xf0]  ;;  %v3495_v19 = vor.u32 %v4260_v10, %v3492_v11  ;;  %v3095_v20 = vor.u32 %v4160_v12, %v3092_v14  ;;  %v2907_v10 = vor.u32 %v4115_v62, %v2906_v61  ;;  %v3290_v11 = vld [vmem:[#allocation5 + $0x3e8] sm:$0xf] }
  0x5a   :  { %1413 = vmatpush.bf16.msrb.mxu3 %v2791_v25  ;;  %1375 = vmatmul.bf16.vlgmr.msrb.gmra.mxu0 %v4670_v34  ;;  %v4224_v17 = vld [vmem:[#allocation5 + $0x464] sm:$0xf]  ;;  %v3348_v18 = vld [vmem:[#allocation5 + $0x470] sm:$0xf0]  ;;  %v3223_v21 = vor.u32 %v4192_v15, %v3220_v16  ;;  %v4211_v12 = vld [vmem:[#allocation5 + $0x3f4] sm:$0xf0]  ;;  %v3163_v16 = vor.u32 %v4179_v3, %v3162_v2 }
  0x5b   :  { %1432 = vmatpush.bf16.msra.mxu0 %v3159_v28  ;;  %1388 = vmatmul.bf16.vlgmr.msrb.gmra.mxu1 %v4672_v39  ;;  %v4256_v22 = vld [vmem:[#allocation5 + $0x564] sm:$0xf]  ;;  %v3476_v23 = vld [vmem:[#allocation5 + $0x570] sm:$0xf0]  ;;  %v3351_v25 = vor.u32 %v4224_v17, %v3348_v18  ;;  %v3034_v14 = vld [vmem:[#allocation5 + $0x1e8] sm:$0xf] }
  0x5c   :  { %1445 = vmatpush.bf16.msra.mxu1 %v3287_v29  ;;  %v4156_v24 = vld [vmem:[#allocation5 + $0x244] sm:$0xf]  ;;  %v3076_v26 = vld [vmem:[#allocation5 + $0x250] sm:$0xf0]  ;;  %v3479_v31 = vor.u32 %v4256_v22, %v3476_v23  ;;  %v4147_v15 = vld [vmem:[#allocation5 + $0x1f4] sm:$0xf0] }
  0x5d   :  { %1426 = vmatpush.bf16.msra.mxu2 %v2919_v38  ;;  %1414 = vmatmul.bf16.vlgmr.msrb.gmra.mxu3 %v4656_v57  ;;  %v4188_v27 = vld [vmem:[#allocation5 + $0x344] sm:$0xf]  ;;  %v3204_v28 = vld [vmem:[#allocation5 + $0x350] sm:$0xf0]  ;;  %v3079_v32 = vor.u32 %v4156_v24, %v3076_v26  ;;  %v2890_v18 = vld [vmem:[#allocation5 + $0xc8] sm:$0xf]  ;;  %v3035_v23 = vor.u32 %v4147_v15, %v3034_v14 }
  0x5e   :  { %1458 = vmatpush.bf16.msra.mxu3 %v3415_v33  ;;  %v4220_v29 = vld [vmem:[#allocation5 + $0x444] sm:$0xf]  ;;  %v3332_v30 = vld [vmem:[#allocation5 + $0x450] sm:$0xf0]  ;;  %v3207_v33 = vor.u32 %v4188_v27, %v3204_v28  ;;  %v4175_v22 = vld [vmem:[#allocation5 + $0x2d4] sm:$0xf0] }
  0x5f   :  { %1433 = vmatpush.bf16.msra.mxu0 %v3143_v43  ;;  %v4252_v35 = vld [vmem:[#allocation5 + $0x544] sm:$0xf]  ;;  %v3460_v36 = vld [vmem:[#allocation5 + $0x550] sm:$0xf0]  ;;  %v3335_v38 = vor.u32 %v4220_v29, %v3332_v30  ;;  %v3274_v24 = vld [vmem:[#allocation5 + $0x3c8] sm:$0xf] }
  0x60   :  { %1446 = vmatpush.bf16.msra.mxu1 %v3271_v44  ;;  %1427 = vmatmul.bf16.vlgmr.msra.gmra.mxu2 %v4662_v9  ;;  %v4152_v37 = vld [vmem:[#allocation5 + $0x224] sm:$0xf]  ;;  %v3060_v40 = vld [vmem:[#allocation5 + $0x230] sm:$0xf0]  ;;  %v3463_v45 = vor.u32 %v4252_v35, %v3460_v36  ;;  %v3018_v27 = vld [vmem:[#allocation5 + $0x1c8] sm:$0xf] }
  0x61   :  { %1471 = vmatpush.bf16.msrb.mxu2 %v3543_v42  ;;  %v4184_v41 = vld [vmem:[#allocation5 + $0x324] sm:$0xf]  ;;  %v3188_v42 = vld [vmem:[#allocation5 + $0x330] sm:$0xf0]  ;;  %v4143_v28 = vld [vmem:[#allocation5 + $0x1d4] sm:$0xf0] }
  0x62   :  { %1459 = vmatpush.bf16.msra.mxu3 %v3399_v49  ;;  %v4216_v43 = vld [vmem:[#allocation5 + $0x424] sm:$0xf]  ;;  %v3316_v44 = vld [vmem:[#allocation5 + $0x430] sm:$0xf0]  ;;  %v3063_v49 = vor.u32 %v4152_v37, %v3060_v40  ;;  %v3191_v50 = vor.u32 %v4184_v41, %v3188_v42  ;;  %v2874_v30 = vld [vmem:[#allocation5 + $0xa8] sm:$0xf]  ;;  %v3019_v36 = vor.u32 %v4143_v28, %v3018_v27 }
  0x63   :  { %1434 = vmatpush.bf16.msra.mxu0 %v3127_v58  ;;  %v4248_v46 = vld [vmem:[#allocation5 + $0x524] sm:$0xf]  ;;  %v3444_v47 = vld [vmem:[#allocation5 + $0x530] sm:$0xf0]  ;;  %v3319_v55 = vor.u32 %v4216_v43, %v3316_v44  ;;  %v4171_v35 = vld [vmem:[#allocation5 + $0x2b4] sm:$0xf0] }
  0x64   :  { %1447 = vmatpush.bf16.msra.mxu1 %v3255_v59  ;;  %v4148_v51 = vld [vmem:[#allocation5 + $0x204] sm:$0xf]  ;;  %v3044_v52 = vld [vmem:[#allocation5 + $0x210] sm:$0xf0]  ;;  %v3258_v37 = vld [vmem:[#allocation5 + $0x3a8] sm:$0xf] }
  0x65   :  { %1472 = vmatpush.bf16.msrb.mxu2 %v3527_v56  ;;  %v4180_v54 = vld [vmem:[#allocation5 + $0x304] sm:$0xf]  ;;  %v3172_v56 = vld [vmem:[#allocation5 + $0x310] sm:$0xf0]  ;;  %v3047_v4 = vor.u32 %v4148_v51, %v3044_v52  ;;  %v3002_v41 = vld [vmem:[#allocation5 + $0x1a8] sm:$0xf] }
  0x66   :  { %1460 = vmatpush.bf16.msra.mxu3 %v3383_v0  ;;  %v4212_v58 = vld [vmem:[#allocation5 + $0x404] sm:$0xf]  ;;  %v3300_v59 = vld [vmem:[#allocation5 + $0x410] sm:$0xf0]  ;;  %v3447_v0 = vor.u32 %v4248_v46, %v3444_v47  ;;  %v3175_v5 = vor.u32 %v4180_v54, %v3172_v56  ;;  %v4139_v42 = vld [vmem:[#allocation5 + $0x1b4] sm:$0xf0] }
  0x67   :  { %1435 = vmatpush.bf16.msra.mxu0 %v3111_v7  ;;  %v4276_v63 = vld [vmem:[#allocation5 + $0x604] sm:$0xf]  ;;  %v3556_v1 = vld [vmem:[#allocation5 + $0x610] sm:$0xf0]  ;;  %v2858_v44 = vld [vmem:[#allocation5 + $0x88] sm:$0xf] }
  0x68   :  { %1448 = vmatpush.bf16.msra.mxu1 %v3239_v8  ;;  %v3428_v7 = vld [vmem:[#allocation5 + $0x510] sm:$0xf0]  ;;  %v3303_v8 = vor.u32 %v4212_v58, %v3300_v59  ;;  %v3114_v47 = vld [vmem:[#allocation5 + $0x288] sm:$0xf]  ;;  %v4199_v52 = vld [vmem:[#allocation5 + $0x394] sm:$0xf0] }
  0x69   :  { %1473 = vmatpush.bf16.msrb.mxu2 %v3511_v6  ;;  %v4244_v6 = vld [vmem:[#allocation5 + $0x504] sm:$0xf]  ;;  %v3242_v51 = vld [vmem:[#allocation5 + $0x388] sm:$0xf]  ;;  %v4135_v56 = vld [vmem:[#allocation5 + $0x194] sm:$0xf0] }
  0x6a   :  { %1461 = vmatpush.bf16.msra.mxu3 %v3367_v13  ;;  %v3559_v13 = vor.u32 %v4276_v63, %v3556_v1  ;;  %v3431_v17 = vor.u32 %v4244_v6, %v3428_v7  ;;  %v2842_v59 = vld [vmem:[#allocation5 + $0x68] sm:$0xf]  ;;  %v4099_v61 = vld [vmem:[#allocation5 + $0x74] sm:$0xf0]  ;;  %v3243_v62 = vor.u32 %v4199_v52, %v3242_v51  ;;  %v4113_v51 = vld [vmem:[#allocation5 + $0xec] sm:$0xf] }
  0x6b   :  { %1436 = vmatpush.bf16.msra.mxu0 %v3095_v20  ;;  %v3291_v20 = vor.u32 %v4211_v12, %v3290_v11  ;;  %v3098_v63 = vld [vmem:[#allocation5 + $0x268] sm:$0xf]  ;;  %v4195_v3 = vld [vmem:[#allocation5 + $0x374] sm:$0xf0]  ;;  %v2908_v52 = vld [vmem:[#allocation5 + $0xf8] sm:$0xf0] }
  0x6c   :  { %1449 = vmatpush.bf16.msra.mxu1 %v3223_v21  ;;  %v3146_v21 = vld [vmem:[#allocation5 + $0x2c8] sm:$0xf]  ;;  %v4131_v6 = vld [vmem:[#allocation5 + $0x174] sm:$0xf0] }
  0x6d   :  { %1474 = vmatpush.bf16.msrb.mxu2 %v3495_v19  ;;  %v4111_v19 = vld [vmem:[#allocation5 + $0xd4] sm:$0xf0]  ;;  %v3147_v29 = vor.u32 %v4175_v22, %v3146_v21  ;;  %v3226_v2 = vld [vmem:[#allocation5 + $0x368] sm:$0xf] }
  0x6e   :  { %1462 = vmatpush.bf16.msra.mxu3 %v3351_v25  ;;  %v4207_v25 = vld [vmem:[#allocation5 + $0x3d4] sm:$0xf0]  ;;  %v2891_v26 = vor.u32 %v4111_v19, %v2890_v18  ;;  %v3227_v11 = vor.u32 %v4195_v3, %v3226_v2  ;;  %v3082_v12 = vld [vmem:[#allocation5 + $0x248] sm:$0xf]  ;;  %v2911_v3 = vor.u32 %v4113_v51, %v2908_v52 }
  0x6f   :  { %1437 = vmatpush.bf16.msra.mxu0 %v3079_v32  ;;  %v3275_v32 = vor.u32 %v4207_v25, %v3274_v24  ;;  %v3210_v15 = vld [vmem:[#allocation5 + $0x348] sm:$0xf]  ;;  %v4127_v19 = vld [vmem:[#allocation5 + $0x154] sm:$0xf0] }
  0x70   :  { %1450 = vmatpush.bf16.msra.mxu1 %v3207_v33  ;;  %v3130_v33 = vld [vmem:[#allocation5 + $0x2a8] sm:$0xf]  ;;  %v4091_v22 = vld [vmem:[#allocation5 + $0x34] sm:$0xf0] }
  0x71   :  { %1475 = vmatpush.bf16.msrb.mxu2 %v3479_v31  ;;  %v4107_v31 = vld [vmem:[#allocation5 + $0xb4] sm:$0xf0]  ;;  %v3131_v43 = vor.u32 %v4171_v35, %v3130_v33  ;;  %v2954_v18 = vld [vmem:[#allocation5 + $0x148] sm:$0xf] }
  0x72   :  { %1463 = vmatpush.bf16.msra.mxu3 %v3335_v38  ;;  %v4203_v38 = vld [vmem:[#allocation5 + $0x3b4] sm:$0xf0]  ;;  %v2875_v40 = vor.u32 %v4107_v31, %v2874_v30  ;;  %v2810_v21 = vld [vmem:[#allocation5 + $0x28] sm:$0xf] }
  0x73   :  { %1438 = vmatpush.bf16.msra.mxu0 %v3063_v49  ;;  %v3259_v46 = vor.u32 %v4203_v38, %v3258_v37  ;;  %v4167_v49 = vld [vmem:[#allocation5 + $0x294] sm:$0xf0]  ;;  %v3066_v24 = vld [vmem:[#allocation5 + $0x228] sm:$0xf] }
  0x74   :  { %1451 = vmatpush.bf16.msra.mxu1 %v3191_v50  ;;  %v3003_v50 = vor.u32 %v4139_v42, %v3002_v41  ;;  %v3115_v58 = vor.u32 %v4167_v49, %v3114_v47  ;;  %v4155_v25 = vld [vmem:[#allocation5 + $0x234] sm:$0xf0]  ;;  %v3194_v27 = vld [vmem:[#allocation5 + $0x328] sm:$0xf] }
  0x75   :  { %1476 = vmatpush.bf16.msrb.mxu2 %v3463_v45  ;;  %v4103_v45 = vld [vmem:[#allocation5 + $0x94] sm:$0xf0]  ;;  %v2938_v30 = vld [vmem:[#allocation5 + $0x128] sm:$0xf]  ;;  %v3067_v33 = vor.u32 %v4155_v25, %v3066_v24 }
  0x76   :  { %1464 = vmatpush.bf16.msra.mxu3 %v3319_v55  ;;  %v2859_v54 = vor.u32 %v4103_v45, %v2858_v44  ;;  %v2986_v55 = vld [vmem:[#allocation5 + $0x188] sm:$0xf]  ;;  %v4187_v28 = vld [vmem:[#allocation5 + $0x334] sm:$0xf0] }
  0x77   :  { %1439 = vmatpush.bf16.msra.mxu0 %v3047_v4  ;;  %v2987_v1 = vor.u32 %v4135_v56, %v2986_v55  ;;  %v2843_v4 = vor.u32 %v4099_v61, %v2842_v59  ;;  %v4123_v31 = vld [vmem:[#allocation5 + $0x134] sm:$0xf0]  ;;  %v3195_v38 = vor.u32 %v4187_v28, %v3194_v27  ;;  %v3050_v41 = vld [vmem:[#allocation5 + $0x208] sm:$0xf]  ;;  %v3004_v27 = vld [vmem:[#allocation5 + $0x1b8] sm:$0xf0] }
  0x78   :  { %1452 = vmatpush.bf16.msra.mxu1 %v3175_v5  ;;  %v2970_v5 = vld [vmem:[#allocation5 + $0x168] sm:$0xf]  ;;  %v4087_v35 = vld [vmem:[#allocation5 + $0x14] sm:$0xf0]  ;;  %v2939_v44 = vor.u32 %v4123_v31, %v2938_v30  ;;  %v4101_v30 = vld [vmem:[#allocation5 + $0x8c] sm:$0xf] }
  0x79   :  { %1477 = vmatpush.bf16.msrb.mxu2 %v3447_v0  ;;  %v4163_v0 = vld [vmem:[#allocation5 + $0x274] sm:$0xf0]  ;;  %v2971_v14 = vor.u32 %v4131_v6, %v2970_v5  ;;  %v3546_v56 = vld [vmem:[#allocation5 + $0x5e8] sm:$0xf]  ;;  %v4109_v5 = vld [vmem:[#allocation5 + $0xcc] sm:$0xf] }
  0x7a   :  { %1465 = vmatpush.bf16.msra.mxu3 %v3303_v8  ;;  %1440 = vmatmul.bf16.vlgmr.msra.gmra.mxu0 %v4654_v53  ;;  %v3099_v7 = vor.u32 %v4163_v0, %v3098_v63  ;;  %v2826_v8 = vld [vmem:[#allocation5 + $0x48] sm:$0xf]  ;;  %v4243_v37 = vld [vmem:[#allocation5 + $0x4f4] sm:$0xf0]  ;;  %v4145_v0 = vld [vmem:[#allocation5 + $0x1ec] sm:$0xf] }
  0x7b   :  { %1523 = vmatpush.bf16.msrb.mxu0 %v3163_v16  ;;  %1453 = vmatmul.bf16.vlgmr.msra.gmra.mxu1 %v4658_v60  ;;  %v4191_v16 = vld [vmem:[#allocation5 + $0x354] sm:$0xf0]  ;;  %v3402_v59 = vld [vmem:[#allocation5 + $0x4c8] sm:$0xf]  ;;  %v2892_v6 = vld [vmem:[#allocation5 + $0xd8] sm:$0xf0] }
  0x7c   :  { %1497 = vmatpush.bf16.msrb.mxu1 %v2907_v10  ;;  %v4095_v10 = vld [vmem:[#allocation5 + $0x54] sm:$0xf0]  ;;  %v3370_v24 = vld [vmem:[#allocation5 + $0x488] sm:$0xf]  ;;  %v2860_v31 = vld [vmem:[#allocation5 + $0x98] sm:$0xf0] }
  0x7d   :  { %1478 = vmatpush.bf16.msrb.mxu2 %v3431_v17  ;;  %1466 = vmatmul.bf16.vlgmr.msra.gmra.mxu3 %v4670_v34  ;;  %v2827_v17 = vor.u32 %v4095_v10, %v2826_v8  ;;  %v4151_v42 = vld [vmem:[#allocation5 + $0x214] sm:$0xf0]  ;;  %v3530_v10 = vld [vmem:[#allocation5 + $0x5c8] sm:$0xf] }
  0x7e   :  { %1491 = vmatpush.bf16.msrb.mxu3 %v3559_v13  ;;  %v4159_v13 = vld [vmem:[#allocation5 + $0x254] sm:$0xf0]  ;;  %v3051_v55 = vor.u32 %v4151_v42, %v3050_v41  ;;  %v2988_v41 = vld [vmem:[#allocation5 + $0x198] sm:$0xf0]  ;;  %v2863_v42 = vor.u32 %v4101_v30, %v2860_v31  ;;  %v3338_v51 = vld [vmem:[#allocation5 + $0x448] sm:$0xf] }
  0x7f   :  { %1524 = vmatpush.bf16.msrb.mxu0 %v3147_v29  ;;  %v2811_v29 = vor.u32 %v4091_v22, %v2810_v21  ;;  %v4183_v45 = vld [vmem:[#allocation5 + $0x314] sm:$0xf0]  ;;  %v3514_v22 = vld [vmem:[#allocation5 + $0x5a8] sm:$0xf]  ;;  %v3292_v30 = vld [vmem:[#allocation5 + $0x3f8] sm:$0xf0] }
  0x80   :  { %1498 = vmatpush.bf16.msrb.mxu1 %v2891_v26  ;;  %1479 = vmatmul.bf16.vlgmr.msrb.gmra.mxu2 %v4672_v39  ;;  %v2955_v26 = vor.u32 %v4127_v19, %v2954_v18  ;;  %v4279_v47 = vld [vmem:[#allocation5 + $0x614] sm:$0xf0]  ;;  %v4105_v18 = vld [vmem:[#allocation5 + $0xac] sm:$0xf]  ;;  %v2876_v19 = vld [vmem:[#allocation5 + $0xb8] sm:$0xf0] }
  0x81   :  { %1536 = vmatpush.bf16.msra.mxu2 %v3291_v20  ;;  %v3083_v20 = vor.u32 %v4159_v13, %v3082_v12  ;;  %v3386_v12 = vld [vmem:[#allocation5 + $0x4a8] sm:$0xf]  ;;  %v4235_v13 = vld [vmem:[#allocation5 + $0x4b4] sm:$0xf0]  ;;  %v2879_v28 = vor.u32 %v4105_v18, %v2876_v19  ;;  %v2940_v18 = vld [vmem:[#allocation5 + $0x138] sm:$0xf0] }
  0x82   :  { %1510 = vmatpush.bf16.msra.mxu3 %v3035_v23  ;;  %v3211_v23 = vor.u32 %v4191_v16, %v3210_v15  ;;  %v3020_v15 = vld [vmem:[#allocation5 + $0x1d8] sm:$0xf0]  ;;  %v2895_v16 = vor.u32 %v4109_v5, %v2892_v6  ;;  %v4231_v25 = vld [vmem:[#allocation5 + $0x494] sm:$0xf0] }
  0x83   :  { %1525 = vmatpush.bf16.msrb.mxu0 %v3131_v43  ;;  %v3178_v43 = vld [vmem:[#allocation5 + $0x308] sm:$0xf]  ;;  %v4223_v52 = vld [vmem:[#allocation5 + $0x454] sm:$0xf0]  ;;  %v2956_v5 = vld [vmem:[#allocation5 + $0x158] sm:$0xf0] }
  0x84   :  { %1499 = vmatpush.bf16.msrb.mxu1 %v2875_v40  ;;  %v2922_v40 = vld [vmem:[#allocation5 + $0x108] sm:$0xf]  ;;  %v3179_v61 = vor.u32 %v4183_v45, %v3178_v43  ;;  %v2844_v45 = vld [vmem:[#allocation5 + $0x78] sm:$0xf0] }
  0x85   :  { %1537 = vmatpush.bf16.msra.mxu2 %v3275_v32  ;;  %v2794_v32 = vld [vmem:[#allocation5 + $0x8] sm:$0xf] }
  0x86   :  { %1511 = vmatpush.bf16.msra.mxu3 %v3019_v36  ;;  %v3418_v36 = vld [vmem:[#allocation5 + $0x4e8] sm:$0xf]  ;;  %v2795_v49 = vor.u32 %v4087_v35, %v2794_v32  ;;  %v3371_v32 = vor.u32 %v4231_v25, %v3370_v24  ;;  %v4085_v24 = vld [vmem:[#allocation5 + $0xc] sm:$0xf]  ;;  %v2796_v25 = vld [vmem:[#allocation5 + $0x18] sm:$0xf0] }
  0x87   :  { %1526 = vmatpush.bf16.msrb.mxu0 %v3115_v58  ;;  %v4275_v58 = vld [vmem:[#allocation5 + $0x5f4] sm:$0xf0]  ;;  %v3498_v35 = vld [vmem:[#allocation5 + $0x588] sm:$0xf] }
  0x88   :  { %1500 = vmatpush.bf16.msrb.mxu1 %v2859_v54  ;;  %v3419_v54 = vor.u32 %v4243_v37, %v3418_v36  ;;  %v4263_v36 = vld [vmem:[#allocation5 + $0x594] sm:$0xf0]  ;;  %v3354_v37 = vld [vmem:[#allocation5 + $0x468] sm:$0xf] }
  0x89   :  { %1538 = vmatpush.bf16.msra.mxu2 %v3259_v46  ;;  %v3562_v46 = vld [vmem:[#allocation5 + $0x608] sm:$0xf]  ;;  %v3499_v43 = vor.u32 %v4263_v36, %v3498_v35  ;;  %v4173_v35 = vld [vmem:[#allocation5 + $0x2cc] sm:$0xf]  ;;  %v2799_v36 = vor.u32 %v4085_v24, %v2796_v25 }
  0x8a   :  { %1512 = vmatpush.bf16.msra.mxu3 %v3003_v50  ;;  %v4119_v50 = vld [vmem:[#allocation5 + $0x114] sm:$0xf0]  ;;  %v3563_v63 = vor.u32 %v4279_v47, %v3562_v46  ;;  %v4193_v24 = vld [vmem:[#allocation5 + $0x36c] sm:$0xf] }
  0x8b   :  { %1527 = vmatpush.bf16.msrb.mxu0 %v3099_v7  ;;  %v2923_v2 = vor.u32 %v4119_v50, %v2922_v40  ;;  %v4133_v40 = vld [vmem:[#allocation5 + $0x18c] sm:$0xf]  ;;  %v4259_v50 = vld [vmem:[#allocation5 + $0x574] sm:$0xf0] }
  0x8c   :  { %1501 = vmatpush.bf16.msrb.mxu1 %v2843_v4  ;;  %v3547_v4 = vor.u32 %v4275_v58, %v3546_v56  ;;  %v2991_v47 = vor.u32 %v4133_v40, %v2988_v41  ;;  %v2924_v40 = vld [vmem:[#allocation5 + $0x118] sm:$0xf0] }
  0x8d   :  { %1539 = vmatpush.bf16.msra.mxu2 %v3243_v62  ;;  %3569 = vmatmul.msk.bf16.vlgmr.msrb.gmra.mxu3 %vm1311_vm0, %v4666_v48  ;;  %v4239_v62 = vld [vmem:[#allocation5 + $0x4d4] sm:$0xf0] }
  0x8e   :  { %1513 = vmatpush.bf16.msra.mxu3 %v2987_v1  ;;  %v3036_v1 = vld [vmem:[#allocation5 + $0x1f8] sm:$0xf0]  ;;  %v3403_v7 = vor.u32 %v4239_v62, %v3402_v59  ;;  %v4093_v59 = vld [vmem:[#allocation5 + $0x4c] sm:$0xf]  ;;  %v3339_v62 = vor.u32 %v4223_v52, %v3338_v51 }
  0x8f   :  { %1528 = vmatpush.bf16.msrb.mxu0 %v3083_v20  ;;  %v3039_v8 = vor.u32 %v4145_v0, %v3036_v1  ;;  %v3387_v20 = vor.u32 %v4235_v13, %v3386_v12  ;;  %v3466_v0 = vld [vmem:[#allocation5 + $0x548] sm:$0xf]  ;;  %v4255_v1 = vld [vmem:[#allocation5 + $0x554] sm:$0xf0]  ;;  %v4237_v51 = vld [vmem:[#allocation5 + $0x4cc] sm:$0xf] }
  0x90   :  { %1502 = vmatpush.bf16.msrb.mxu1 %v2827_v17  ;;  %v3450_v13 = vld [vmem:[#allocation5 + $0x528] sm:$0xf]  ;;  %v3404_v52 = vld [vmem:[#allocation5 + $0x4d8] sm:$0xf0] }
  0x91   :  { %1540 = vmatpush.bf16.msra.mxu2 %v3227_v11  ;;  %v4271_v11 = vld [vmem:[#allocation5 + $0x5d4] sm:$0xf0] }
  0x92   :  { %1514 = vmatpush.bf16.msra.mxu3 %v2971_v14  ;;  %v4141_v14 = vld [vmem:[#allocation5 + $0x1cc] sm:$0xf]  ;;  %v3531_v17 = vor.u32 %v4271_v11, %v3530_v10  ;;  %v2812_v10 = vld [vmem:[#allocation5 + $0x38] sm:$0xf0] }
  0x93   :  { %1529 = vmatpush.bf16.msrb.mxu0 %v3067_v33  ;;  %v3023_v21 = vor.u32 %v4141_v14, %v3020_v15  ;;  %v4251_v14 = vld [vmem:[#allocation5 + $0x534] sm:$0xf0]  ;;  %v3306_v15 = vld [vmem:[#allocation5 + $0x408] sm:$0xf] }
  0x94   :  { %1503 = vmatpush.bf16.msrb.mxu1 %v2811_v29 }
  0x95   :  { %1541 = vmatpush.bf16.msra.mxu2 %v3211_v23  ;;  %v4267_v23 = vld [vmem:[#allocation5 + $0x5b4] sm:$0xf0] }
  0x96   :  { %1515 = vmatpush.bf16.msra.mxu3 %v2955_v26  ;;  %v4137_v26 = vld [vmem:[#allocation5 + $0x1ac] sm:$0xf]  ;;  %v3515_v29 = vor.u32 %v4267_v23, %v3514_v22  ;;  %v3451_v22 = vor.u32 %v4251_v14, %v3450_v13  ;;  %v3434_v23 = vld [vmem:[#allocation5 + $0x508] sm:$0xf]  ;;  %v3244_v14 = vld [vmem:[#allocation5 + $0x398] sm:$0xf0] }
  0x97   :  { %1530 = vmatpush.bf16.msrb.mxu0 %v3051_v55  ;;  %v3007_v33 = vor.u32 %v4137_v26, %v3004_v27  ;;  %v2972_v55 = vld [vmem:[#allocation5 + $0x178] sm:$0xf0] }
  0x98   :  { %1504 = vmatpush.bf16.msrb.mxu1 %v2795_v49  ;;  %v3482_v49 = vld [vmem:[#allocation5 + $0x568] sm:$0xf] }
  0x99   :  { %1542 = vmatpush.bf16.msra.mxu2 %v3195_v38  ;;  %v4227_v38 = vld [vmem:[#allocation5 + $0x474] sm:$0xf0]  ;;  %v3483_v58 = vor.u32 %v4259_v50, %v3482_v49  ;;  %v3276_v50 = vld [vmem:[#allocation5 + $0x3d8] sm:$0xf0] }
  0x9a   :  { %1516 = vmatpush.bf16.msra.mxu3 %v2939_v44  ;;  %1531 = vmatmul.bf16.vlgmr.msrb.gmra.mxu0 %v4654_v53  ;;  %v4097_v44 = vld [vmem:[#allocation5 + $0x6c] sm:$0xf]  ;;  %v3355_v46 = vor.u32 %v4227_v38, %v3354_v37  ;;  %v3148_v37 = vld [vmem:[#allocation5 + $0x2d8] sm:$0xf0] }
  0x9b   :  { %1582 = vmatpush.bf16.msra.mxu0 %v3563_v63  ;;  %1505 = vmatmul.bf16.vlgmr.msrb.gmra.mxu1 %v4656_v57  ;;  %v2847_v56 = vor.u32 %v4097_v44, %v2844_v45  ;;  %v4117_v38 = vld [vmem:[#allocation5 + $0x10c] sm:$0xf] }
  0x9c   :  { %1549 = vmatpush.bf16.msra.mxu1 %v3419_v54  ;;  %v4129_v54 = vld [vmem:[#allocation5 + $0x16c] sm:$0xf]  ;;  %v2927_v49 = vor.u32 %v4117_v38, %v2924_v40 }
  0x9d   :  { %1543 = vmatpush.bf16.msra.mxu2 %v3179_v61  ;;  %v2828_v61 = vld [vmem:[#allocation5 + $0x58] sm:$0xf0]  ;;  %v2975_v63 = vor.u32 %v4129_v54, %v2972_v55  ;;  %v4169_v55 = vld [vmem:[#allocation5 + $0x2ac] sm:$0xf] }
  0x9e   :  { %1517 = vmatpush.bf16.msra.mxu3 %v2923_v2  ;;  %v3322_v2 = vld [vmem:[#allocation5 + $0x428] sm:$0xf]  ;;  %v2831_v6 = vor.u32 %v4093_v59, %v2828_v61  ;;  %v3532_v59 = vld [vmem:[#allocation5 + $0x5d8] sm:$0xf0]  ;;  %v4189_v38 = vld [vmem:[#allocation5 + $0x34c] sm:$0xf] }
  0x9f   :  { %1601 = vmatpush.bf16.msrb.mxu0 %v3039_v8  ;;  %v4089_v8 = vld [vmem:[#allocation5 + $0x2c] sm:$0xf] }
  0xa0   :  { %1550 = vmatpush.bf16.msra.mxu1 %v3403_v7  ;;  %1544 = vmatmul.bf16.vlgmr.msra.gmra.mxu2 %v4658_v60  ;;  %v3467_v7 = vor.u32 %v4255_v1, %v3466_v0  ;;  %v2815_v19 = vor.u32 %v4089_v8, %v2812_v10  ;;  %v3260_v1 = vld [vmem:[#allocation5 + $0x3b8] sm:$0xf0] }
  0xa1   :  { %1588 = vmatpush.bf16.msrb.mxu2 %v2911_v3  ;;  %1518 = vmatmul.bf16.vlgmr.msra.gmra.mxu3 %v4662_v9  ;;  %v4219_v3 = vld [vmem:[#allocation5 + $0x434] sm:$0xf0]  ;;  %v3516_v8 = vld [vmem:[#allocation5 + $0x5b8] sm:$0xf0] }
  0xa2   :  { %1562 = vmatpush.bf16.msrb.mxu3 %v3547_v4  ;;  %v4125_v4 = vld [vmem:[#allocation5 + $0x14c] sm:$0xf]  ;;  %v3323_v11 = vor.u32 %v4219_v3, %v3322_v2  ;;  %v3388_v3 = vld [vmem:[#allocation5 + $0x4b8] sm:$0xf0] }
  0xa3   :  { %1602 = vmatpush.bf16.msrb.mxu0 %v3023_v21  ;;  %v2959_v12 = vor.u32 %v4125_v4, %v2956_v5  ;;  %v3164_v21 = vld [vmem:[#allocation5 + $0x2f8] sm:$0xf0]  ;;  %v4233_v2 = vld [vmem:[#allocation5 + $0x4ac] sm:$0xf] }
  0xa4   :  { %1551 = vmatpush.bf16.msra.mxu1 %v3387_v20  ;;  %v4177_v20 = vld [vmem:[#allocation5 + $0x2ec] sm:$0xf] }
  0xa5   :  { %1589 = vmatpush.bf16.msrb.mxu2 %v2895_v16  ;;  %v4215_v16 = vld [vmem:[#allocation5 + $0x414] sm:$0xf0]  ;;  %v3167_v31 = vor.u32 %v4177_v20, %v3164_v21  ;;  %v4165_v5 = vld [vmem:[#allocation5 + $0x28c] sm:$0xf]  ;;  %v3500_v21 = vld [vmem:[#allocation5 + $0x598] sm:$0xf0] }
  0xa6   :  { %1563 = vmatpush.bf16.msrb.mxu3 %v3531_v17  ;;  %v4121_v17 = vld [vmem:[#allocation5 + $0x12c] sm:$0xf]  ;;  %v3307_v26 = vor.u32 %v4215_v16, %v3306_v15  ;;  %v3372_v16 = vld [vmem:[#allocation5 + $0x498] sm:$0xf0] }
  0xa7   :  { %1603 = vmatpush.bf16.msrb.mxu0 %v3007_v33  ;;  %v2943_v27 = vor.u32 %v4121_v17, %v2940_v18  ;;  %v3420_v33 = vld [vmem:[#allocation5 + $0x4f8] sm:$0xf0]  ;;  %v4229_v15 = vld [vmem:[#allocation5 + $0x48c] sm:$0xf] }
  0xa8   :  { %1552 = vmatpush.bf16.msra.mxu1 %v3371_v32  ;;  %v4241_v32 = vld [vmem:[#allocation5 + $0x4ec] sm:$0xf] }
  0xa9   :  { %1590 = vmatpush.bf16.msrb.mxu2 %v2879_v28  ;;  %v4247_v28 = vld [vmem:[#allocation5 + $0x514] sm:$0xf0]  ;;  %v3423_v45 = vor.u32 %v4241_v32, %v3420_v33  ;;  %v4161_v18 = vld [vmem:[#allocation5 + $0x26c] sm:$0xf]  ;;  %v3484_v33 = vld [vmem:[#allocation5 + $0x578] sm:$0xf0] }
  0xaa   :  { %1564 = vmatpush.bf16.msrb.mxu3 %v3515_v29  ;;  %3570 = vmatmul.msk.bf16.vlgmr.msra.gmra.mxu0 %vm1311_vm0, %v4666_v48  ;;  %v4209_v29 = vld [vmem:[#allocation5 + $0x3ec] sm:$0xf]  ;;  %v3435_v41 = vor.u32 %v4247_v28, %v3434_v23  ;;  %v3375_v23 = vor.u32 %v4229_v15, %v3372_v16  ;;  %v3356_v28 = vld [vmem:[#allocation5 + $0x478] sm:$0xf0] }
  0xab   :  { %1604 = vmatpush.bf16.msrb.mxu0 %v2991_v47  ;;  %v3295_v44 = vor.u32 %v4209_v29, %v3292_v30  ;;  %v3151_v47 = vor.u32 %v4173_v35, %v3148_v37  ;;  %v4157_v30 = vld [vmem:[#allocation5 + $0x24c] sm:$0xf]  ;;  %v3308_v15 = vld [vmem:[#allocation5 + $0x418] sm:$0xf0] }
  0xac   :  { %1553 = vmatpush.bf16.msra.mxu1 %v3355_v46  ;;  %v4205_v46 = vld [vmem:[#allocation5 + $0x3cc] sm:$0xf] }
  0xad   :  { %1591 = vmatpush.bf16.msrb.mxu2 %v2863_v42  ;;  %v4273_v42 = vld [vmem:[#allocation5 + $0x5ec] sm:$0xf]  ;;  %v3279_v61 = vor.u32 %v4205_v46, %v3276_v50 }
  0xae   :  { %1565 = vmatpush.bf16.msrb.mxu3 %v3499_v43  ;;  %v3548_v43 = vld [vmem:[#allocation5 + $0x5f8] sm:$0xf0]  ;;  %v4257_v32 = vld [vmem:[#allocation5 + $0x56c] sm:$0xf] }
  0xaf   :  { %1605 = vmatpush.bf16.msrb.mxu0 %v2975_v63  ;;  %v3551_v54 = vor.u32 %v4273_v42, %v3548_v43  ;;  %v4201_v63 = vld [vmem:[#allocation5 + $0x3ac] sm:$0xf]  ;;  %v3212_v42 = vld [vmem:[#allocation5 + $0x358] sm:$0xf0] }
  0xb0   :  { %1554 = vmatpush.bf16.msra.mxu1 %v3339_v62  ;;  %v3407_v62 = vor.u32 %v4237_v51, %v3404_v52  ;;  %v3263_v10 = vor.u32 %v4201_v63, %v3260_v1  ;;  %v4221_v43 = vld [vmem:[#allocation5 + $0x44c] sm:$0xf]  ;;  %v3468_v51 = vld [vmem:[#allocation5 + $0x558] sm:$0xf0]  ;;  %v3215_v52 = vor.u32 %v4189_v38, %v3212_v42  ;;  %v3654_v42 = vld [vmem:[#allocation8 + $0xa0] sm:$0xf] }
  0xb1   :  { %1592 = vmatpush.bf16.msrb.mxu2 %v2847_v56  ;;  %v3132_v56 = vld [vmem:[#allocation5 + $0x2b8] sm:$0xf0]  ;;  %v4153_v46 = vld [vmem:[#allocation5 + $0x22c] sm:$0xf] }
  0xb2   :  { %1566 = vmatpush.bf16.msrb.mxu3 %v3483_v58  ;;  %v4269_v58 = vld [vmem:[#allocation5 + $0x5cc] sm:$0xf]  ;;  %v3135_v0 = vor.u32 %v4169_v55, %v3132_v56 }
  0xb3   :  { %1606 = vmatpush.bf16.msrb.mxu0 %v2959_v12  ;;  %v3535_v4 = vor.u32 %v4269_v58, %v3532_v59  ;;  %v4197_v12 = vld [vmem:[#allocation5 + $0x38c] sm:$0xf]  ;;  %v3196_v58 = vld [vmem:[#allocation5 + $0x338] sm:$0xf0] }
  0xb4   :  { %1555 = vmatpush.bf16.msra.mxu1 %v3323_v11  ;;  %v3391_v11 = vor.u32 %v4233_v2, %v3388_v3  ;;  %v4253_v50 = vld [vmem:[#allocation5 + $0x54c] sm:$0xf]  ;;  %v3452_v3 = vld [vmem:[#allocation5 + $0x538] sm:$0xf0] }
  0xb5   :  { %1593 = vmatpush.bf16.msrb.mxu2 %v2831_v6  ;;  %v3116_v6 = vld [vmem:[#allocation5 + $0x298] sm:$0xf0]  ;;  %v4185_v55 = vld [vmem:[#allocation5 + $0x32c] sm:$0xf] }
  0xb6   :  { %1567 = vmatpush.bf16.msrb.mxu3 %v3467_v7  ;;  %v4265_v7 = vld [vmem:[#allocation5 + $0x5ac] sm:$0xf]  ;;  %v3119_v13 = vor.u32 %v4165_v5, %v3116_v6  ;;  %v4694_v20 = vpop.f32.mrf.mxu0  ;;  %v3564_v5 = vld [vmem:[#allocation5 + $0x618] sm:$0xf0]  ;;  %v4702_v6 = vld [vmem:[#allocation7] sm:$0xf] }
  0xb7   :  { %1607 = vmatpush.bf16.msrb.mxu0 %v2943_v27  ;;  %v3519_v17 = vor.u32 %v4265_v7, %v3516_v8  ;;  %v4225_v27 = vld [vmem:[#allocation5 + $0x46c] sm:$0xf]  ;;  %v4696_v29 = vpop.f32.mrf.mxu1  ;;  %v3199_v8 = vor.u32 %v4185_v55, %v3196_v58 }
  0xb8   :  { %1556 = vmatpush.bf16.msra.mxu1 %v3307_v26  ;;  %v3228_v26 = vld [vmem:[#allocation5 + $0x378] sm:$0xf0]  ;;  %v3359_v37 = vor.u32 %v4225_v27, %v3356_v28  ;;  %v4217_v59 = vld [vmem:[#allocation5 + $0x42c] sm:$0xf] }
  0xb9   :  { %1594 = vmatpush.bf16.msrb.mxu2 %v2815_v19  ;;  %v3100_v19 = vld [vmem:[#allocation5 + $0x278] sm:$0xf0]  ;;  %v4149_v63 = vld [vmem:[#allocation5 + $0x20c] sm:$0xf] }
  0xba   :  { %1568 = vmatpush.bf16.msrb.mxu3 %v3451_v22  ;;  %v3247_v22 = vor.u32 %v4197_v12, %v3244_v14  ;;  %v3103_v25 = vor.u32 %v4161_v18, %v3100_v19  ;;  %v4249_v1 = vld [vmem:[#allocation5 + $0x52c] sm:$0xf]  ;;  %v3686_v18 = vld [vmem:[#allocation8 + $0xe0] sm:$0xf]  ;;  %v4310_v19 = vld [vmem:[#allocation8 + $0xec] sm:$0xf0] }
  0xbb   :  { %1557 = vmatmul.bf16.vlgmr.msra.gmra.mxu1 %v4670_v34  ;;  %1608 = vmatpush.bf16.msrb.mxu0 %v2927_v49  ;;  %v4213_v14 = vld [vmem:[#allocation5 + $0x40c] sm:$0xf]  ;;  %v3687_v28 = vor.u32 %v4310_v19, %v3686_v18  ;;  %v3574_v18 = vld [vmem:[#allocation8] sm:$0xf]  ;;  %v4282_v19 = vld [vmem:[#allocation8 + $0xc] sm:$0xf0] }
  0xbc   :  { %1614 = vmatpush.bf16.msrb.mxu1 %v3167_v31  ;;  %v3084_v31 = vld [vmem:[#allocation5 + $0x258] sm:$0xf0]  ;;  %v3311_v27 = vor.u32 %v4213_v14, %v3308_v15  ;;  %v3718_v15 = vld [vmem:[#allocation8 + $0x120] sm:$0xf] }
  0xbd   :  { %1595 = vmatpush.bf16.msrb.mxu2 %v2799_v36  ;;  %v3231_v36 = vor.u32 %v4193_v24, %v3228_v26  ;;  %v3087_v40 = vor.u32 %v4157_v30, %v3084_v31  ;;  %v4342_v24 = vld [vmem:[#allocation8 + $0x1ec] sm:$0xf0]  ;;  %v3670_v30 = vld [vmem:[#allocation8 + $0xc0] sm:$0xf] }
  0xbe   :  { %1569 = vmatpush.bf16.msrb.mxu3 %v3435_v41  ;;  %1609 = vmatmul.bf16.vlgmr.msrb.gmra.mxu0 %v4662_v9  ;;  %v4698_v35 = vpop.f32.mrf.mxu2  ;;  %v1326_v49 = vpop.f32.mrf.mxu0  ;;  %v4306_v31 = vld [vmem:[#allocation8 + $0xcc] sm:$0xf0] }
  0xbf   :  { %1653 = vmatpush.bf16.msra.mxu0 %v3551_v54  ;;  %v1339_v2 = vpop.f32.mrf.mxu1  ;;  %v4298_v49 = vld [vmem:[#allocation8 + $0x8c] sm:$0xf0] }
  0xc0   :  { %1615 = vmatpush.bf16.msrb.mxu1 %v3151_v47  ;;  %1596 = vmatmul.bf16.vlgmr.msrb.gmra.mxu2 %v4656_v57  ;;  %v4261_v57 = vld [vmem:[#allocation5 + $0x58c] sm:$0xf]  ;;  %v4700_v41 = vpop.f32.mrf.mxu3  ;;  %v3068_v47 = vld [vmem:[#allocation5 + $0x238] sm:$0xf0]  ;;  %v4290_v2 = vld [vmem:[#allocation8 + $0x4c] sm:$0xf0] }
  0xc1   :  { %1640 = vmatpush.bf16.msra.mxu2 %v3423_v45  ;;  %1570 = vmatmul.bf16.vlgmr.msrb.gmra.mxu3 %v4672_v39  ;;  %v3503_v9 = vor.u32 %v4261_v57, %v3500_v21  ;;  %v3487_v45 = vor.u32 %v4257_v32, %v3484_v33  ;;  %v3071_v56 = vor.u32 %v4153_v46, %v3068_v47  ;;  %v4245_v57 = vld [vmem:[#allocation5 + $0x50c] sm:$0xf]  ;;  %v3798_v33 = vld [vmem:[#allocation8 + $0x1c0] sm:$0xf]  ;;  %v4334_v46 = vld [vmem:[#allocation8 + $0x1ac] sm:$0xf0] }
  0xc2   :  { %1627 = vmatpush.bf16.msra.mxu3 %v3295_v44  ;;  %v3340_v44 = vld [vmem:[#allocation5 + $0x458] sm:$0xf0] }
  0xc3   :  { %1654 = vmatpush.bf16.msra.mxu0 %v3535_v4  ;;  %v3343_v54 = vor.u32 %v4221_v43, %v3340_v44  ;;  %v4277_v4 = vld [vmem:[#allocation5 + $0x60c] sm:$0xf]  ;;  %v4302_v43 = vld [vmem:[#allocation8 + $0xac] sm:$0xf0] }
  0xc4   :  { %1616 = vmatpush.bf16.msrb.mxu1 %v3135_v0  ;;  %v3052_v0 = vld [vmem:[#allocation5 + $0x218] sm:$0xf0]  ;;  %v3567_v21 = vor.u32 %v4277_v4, %v3564_v5  ;;  %v3734_v4 = vld [vmem:[#allocation8 + $0x140] sm:$0xf]  ;;  %v4322_v5 = vld [vmem:[#allocation8 + $0x14c] sm:$0xf0] }
  0xc5   :  { %1641 = vmatpush.bf16.msra.mxu2 %v3407_v62  ;;  %v3471_v62 = vor.u32 %v4253_v50, %v3468_v51  ;;  %v3055_v12 = vor.u32 %v4149_v63, %v3052_v0  ;;  %v3735_v14 = vor.u32 %v4322_v5, %v3734_v4  ;;  %v4358_v4 = vld [vmem:[#allocation8 + $0x26c] sm:$0xf0]  ;;  %v300_v5 = vperm.slane %v4702_v6, 1 }
  0xc6   :  { %1628 = vmatpush.bf16.msra.mxu3 %v3279_v61  ;;  %v3324_v61 = vld [vmem:[#allocation5 + $0x438] sm:$0xf0]  ;;  %v1352_v7 = vpop.f32.mrf.mxu2 }
  0xc7   :  { %1655 = vmatpush.bf16.msra.mxu0 %v3519_v17  ;;  %v3455_v17 = vor.u32 %v4249_v1, %v3452_v3  ;;  %v3606_v1 = vld [vmem:[#allocation8 + $0x40] sm:$0xf] }
  0xc8   :  { %1617 = vmatpush.bf16.msrb.mxu1 %v3119_v13  ;;  %v3180_v13 = vld [vmem:[#allocation5 + $0x318] sm:$0xf0]  ;;  %v1365_v16 = vpop.f32.mrf.mxu3 }
  0xc9   :  { %1642 = vmatpush.bf16.msra.mxu2 %v3391_v11  ;;  %v4181_v11 = vld [vmem:[#allocation5 + $0x30c] sm:$0xf]  ;;  %v4318_v16 = vld [vmem:[#allocation8 + $0x12c] sm:$0xf0] }
  0xca   :  { %1629 = vmatpush.bf16.msra.mxu3 %v3263_v10  ;;  %v3327_v10 = vor.u32 %v4217_v59, %v3324_v61  ;;  %v3183_v26 = vor.u32 %v4181_v11, %v3180_v13  ;;  %v4294_v59 = vld [vmem:[#allocation8 + $0x6c] sm:$0xf0]  ;;  %v3750_v61 = vld [vmem:[#allocation8 + $0x160] sm:$0xf] }
  0xcb   :  { %1656 = vmatpush.bf16.msra.mxu0 %v3503_v9  ;;  %v4286_v13 = vld [vmem:[#allocation8 + $0x2c] sm:$0xf0] }
  0xcc   :  { %1618 = vmatpush.bf16.msrb.mxu1 %v3103_v25  ;;  %v299_v25 = vperm.slane %v4702_v6, 0 }
  0xcd   :  { %1643 = vmatpush.bf16.msra.mxu2 %v3375_v23  ;;  %v3814_v23 = vld [vmem:[#allocation8 + $0x1e0] sm:$0xf] }
  0xce   :  { %1630 = vmatpush.bf16.msra.mxu3 %v3247_v22  ;;  %v3436_v22 = vld [vmem:[#allocation5 + $0x518] sm:$0xf0]  ;;  %v3815_v32 = vor.u32 %v4342_v24, %v3814_v23  ;;  %v4707_v38 = vpop.f32.mrf.mxu2  ;;  %v4374_v23 = vld [vmem:[#allocation8 + $0x2ec] sm:$0xf0] }
  0xcf   :  { %1657 = vmatpush.bf16.msra.mxu0 %v3487_v45  ;;  %v3439_v9 = vor.u32 %v4245_v57, %v3436_v22  ;;  %v3782_v45 = vld [vmem:[#allocation8 + $0x1a0] sm:$0xf] }
  0xd0   :  { %1619 = vmatpush.bf16.msrb.mxu1 %v3087_v40  ;;  %v3671_v40 = vor.u32 %v4306_v31, %v3670_v30  ;;  %v3783_v50 = vor.u32 %v4334_v46, %v3782_v45  ;;  %v3942_v22 = vld [vmem:[#allocation8 + $0x2e0] sm:$0xf]  ;;  %v3816_v30 = vld [vmem:[#allocation8 + $0x1f0] sm:$0xf0]  ;;  %v3575_v31 = vor.u32 %v4282_v19, %v3574_v18  ;;  %v4336_v46 = vld [vmem:[#allocation8 + $0x1c4] sm:$0xf] }
  0xd1   :  { %1644 = vmatpush.bf16.msra.mxu2 %v3359_v37  ;;  %v1325_v37 = vadd.f32 %v4694_v20, %v299_v25  ;;  %v3638_v20 = vld [vmem:[#allocation8 + $0x80] sm:$0xf]  ;;  %v3688_v25 = vld [vmem:[#allocation8 + $0xf0] sm:$0xf0]  ;;  %v4288_v19 = vld [vmem:[#allocation8 + $0x44] sm:$0xf] }
  0xd2   :  { %1631 = vmatpush.bf16.msra.mxu3 %v3231_v36  ;;  %v4338_v36 = vld [vmem:[#allocation8 + $0x1cc] sm:$0xf0]  ;;  %v3639_v58 = vor.u32 %v4298_v49, %v3638_v20  ;;  %v3910_v49 = vld [vmem:[#allocation8 + $0x2a0] sm:$0xf] }
  0xd3   :  { %1658 = vmatpush.bf16.msra.mxu0 %v3471_v62  ;;  %v3799_v44 = vor.u32 %v4338_v36, %v3798_v33  ;;  %v1338_v47 = vadd.f32 %v4696_v29, %v1325_v37  ;;  %v3622_v29 = vld [vmem:[#allocation8 + $0x60] sm:$0xf] }
  0xd4   :  { %1620 = vmatpush.bf16.msrb.mxu1 %v3071_v56  ;;  %v3623_v63 = vor.u32 %v4294_v59, %v3622_v29  ;;  %v3894_v29 = vld [vmem:[#allocation8 + $0x280] sm:$0xf]  ;;  %v4362_v59 = vld [vmem:[#allocation8 + $0x28c] sm:$0xf0] }
  0xd5   :  { %1645 = vmatpush.bf16.msra.mxu2 %v3343_v54  ;;  %v4330_v54 = vld [vmem:[#allocation8 + $0x18c] sm:$0xf0]  ;;  %v1351_v55 = vadd.f32 %v4698_v35, %v1338_v47  ;;  %v3800_v47 = vld [vmem:[#allocation8 + $0x1d0] sm:$0xf0] }
  0xd6   :  { %1632 = vmatpush.bf16.msra.mxu3 %v3215_v52  ;;  %v3766_v52 = vld [vmem:[#allocation8 + $0x180] sm:$0xf]  ;;  %v1404_v56 = vpop.f32.mrf.mxu2 }
  0xd7   :  { %1659 = vmatpush.bf16.msra.mxu0 %v3455_v17  ;;  %v1376_v51 = vpop.f32.mrf.mxu0  ;;  %v1364_v62 = vadd.f32 %v4700_v41, %v1351_v55  ;;  %v3784_v56 = vld [vmem:[#allocation8 + $0x1b0] sm:$0xf0] }
  0xd8   :  { %1621 = vmatpush.bf16.msrb.mxu1 %v3055_v12  ;;  %v3590_v12 = vld [vmem:[#allocation8 + $0x20] sm:$0xf] }
  0xd9   :  { %1646 = vmatpush.bf16.msra.mxu2 %v3327_v10  ;;  %v1377_v0 = vadd.f32 %v1376_v51, %v1364_v62  ;;  %v3607_v10 = vor.u32 %v4290_v2, %v3606_v1  ;;  %v3591_v17 = vor.u32 %v4286_v13, %v3590_v12  ;;  %v4300_v51 = vld [vmem:[#allocation8 + $0xa4] sm:$0xf]  ;;  %v3895_v62 = vor.u32 %v4362_v59, %v3894_v29 }
  0xda   :  { %1633 = vmatpush.bf16.msra.mxu3 %v3199_v8  ;;  %v4324_v13 = vld [vmem:[#allocation8 + $0x164] sm:$0xf] }
  0xdb   :  { %1622 = vmatmul.bf16.vlgmr.msrb.gmra.mxu1 %v4654_v53  ;;  %1660 = vmatpush.bf16.msra.mxu0 %v3439_v9  ;;  %v3655_v53 = vor.u32 %v4302_v43, %v3654_v42  ;;  %v4340_v9 = vld [vmem:[#allocation8 + $0x1e4] sm:$0xf]  ;;  %v3672_v43 = vld [vmem:[#allocation8 + $0xd0] sm:$0xf0] }
  0xdc   :  { %1673 = vmatpush.bf16.msra.mxu1 %v3567_v21  ;;  %v3719_v21 = vor.u32 %v4318_v16, %v3718_v15  ;;  %v4304_v42 = vld [vmem:[#allocation8 + $0xc4] sm:$0xf]  ;;  %v3862_v16 = vld [vmem:[#allocation8 + $0x240] sm:$0xf] }
  0xdd   :  { %1647 = vmatpush.bf16.msra.mxu2 %v3311_v27  ;;  %v4314_v27 = vld [vmem:[#allocation8 + $0x10c] sm:$0xf0]  ;;  %v3675_v20 = vor.u32 %v4304_v42, %v3672_v43  ;;  %v4280_v42 = vld [vmem:[#allocation8 + $0x4] sm:$0xf] }
  0xde   :  { %1634 = vmatpush.bf16.msra.mxu3 %v3183_v26  ;;  %1661 = vmatmul.bf16.vlgmr.msra.gmra.mxu0 %v4672_v39  ;;  %v4326_v39 = vld [vmem:[#allocation8 + $0x16c] sm:$0xf0]  ;;  %v3702_v26 = vld [vmem:[#allocation8 + $0x100] sm:$0xf] }
  0xdf   :  { %v3751_v3 = vor.u32 %v4326_v39, %v3750_v61  ;;  %v1378_v7 = vpop.f32.mrf.mxu0  ;;  %v3703_v37 = vor.u32 %v4314_v27, %v3702_v26  ;;  %v3640_v61 = vld [vmem:[#allocation8 + $0x90] sm:$0xf0] }
  0xe0   :  { %2478 = vmatpush.bf16.msrb.mxu1 %v3815_v32  ;;  %1648 = vmatmul.bf16.vlgmr.msra.gmra.mxu2 %v4670_v34  ;;  %v3767_v34 = vor.u32 %v4330_v54, %v3766_v52  ;;  %v4715_v35 = vpop.f32.mrf.mxu3  ;;  %v3656_v52 = vld [vmem:[#allocation8 + $0xb0] sm:$0xf0]  ;;  %v3803_v54 = vor.u32 %v4336_v46, %v3800_v47  ;;  %v4346_v46 = vld [vmem:[#allocation8 + $0x20c] sm:$0xf0]  ;;  %v3694_v47 = vld [vmem:[#allocation8 + $0xe8] sm:$0xf] }
  0xe1   :  { %1635 = vmatmul.bf16.vlgmr.msra.gmra.mxu3 %v4658_v60  ;;  %v1389_v60 = vpop.f32.mrf.mxu1  ;;  %v1416_v18 = vadd.f32 %v4715_v35, %v300_v5 }
  0xe2   :  { %2465 = vmatpush.bf16.msrb.mxu3 %v3687_v28  ;;  %v1390_v41 = vadd.f32 %v1389_v60, %v1377_v0  ;;  %v3943_v28 = vor.u32 %v4374_v23, %v3942_v22  ;;  %v4332_v60 = vld [vmem:[#allocation8 + $0x1a4] sm:$0xf]  ;;  %v3768_v0 = vld [vmem:[#allocation8 + $0x190] sm:$0xf0] }
  0xe3   :  { %v4719_v11 = vpop.f32.mrf.mxu2  ;;  %v3787_v39 = vor.u32 %v4332_v60, %v3784_v56  ;;  %v4320_v23 = vld [vmem:[#allocation8 + $0x144] sm:$0xf] }
  0xe4   :  { %2479 = vmatpush.bf16.msrb.mxu1 %v3799_v44  ;;  %v1403_v57 = vadd.f32 %v4707_v38, %v1390_v41  ;;  %2491 = vmatpush.bf16.msrb.mxu2 %v3943_v28  ;;  %v3926_v38 = vld [vmem:[#allocation8 + $0x2c0] sm:$0xf]  ;;  %v3819_v44 = vor.u32 %v4340_v9, %v3816_v30  ;;  %v4350_v9 = vld [vmem:[#allocation8 + $0x22c] sm:$0xf0]  ;;  %v1429_v30 = vadd.f32 %v4719_v11, %v1416_v18  ;;  %v3822_v18 = vld [vmem:[#allocation8 + $0x1e8] sm:$0xf] }
  0xe5   :  { %v3846_v28 = vld [vmem:[#allocation8 + $0x220] sm:$0xf] }
  0xe6   :  { %2466 = vmatpush.bf16.msrb.mxu3 %v3671_v40  ;;  %v1679_v33 = vmax.f32 %v1403_v57, 0.0  ;;  %v4370_v40 = vld [vmem:[#allocation8 + $0x2cc] sm:$0xf0]  ;;  %v3608_v57 = vld [vmem:[#allocation8 + $0x50] sm:$0xf0] }
  0xe7   :  { %v3927_v45 = vor.u32 %v4370_v40, %v3926_v38  ;;  %v3611_v27 = vor.u32 %v4288_v19, %v3608_v57  ;;  %v3720_v38 = vld [vmem:[#allocation8 + $0x130] sm:$0xf0]  ;;  %v4343_v19 = vld [vmem:[#allocation8 + $0x1f4] sm:$0xf0] }
  0xe8   :  { %2480 = vmatpush.bf16.msrb.mxu1 %v3783_v50  ;;  %v1417_v24 = vpop.f32.mrf.mxu3  ;;  %v4366_v50 = vld [vmem:[#allocation8 + $0x2ac] sm:$0xf0] }
  0xe9   :  { %v1391_v8 = vpop.f32.mrf.mxu1  ;;  %2492 = vmatpush.bf16.msrb.mxu2 %v3927_v45  ;;  %v3911_v55 = vor.u32 %v4366_v50, %v3910_v49  ;;  %v3736_v24 = vld [vmem:[#allocation8 + $0x150] sm:$0xf0]  ;;  %v3830_v45 = vld [vmem:[#allocation8 + $0x200] sm:$0xf]  ;;  %v4372_v49 = vld [vmem:[#allocation8 + $0x2e4] sm:$0xf] }
  0xea   :  { %2467 = vmatpush.bf16.msrb.mxu3 %v3655_v53  ;;  %v4722_v53 = vpack.c.bf16 %v1679_v33, %v1679_v33  ;;  %v4292_v8 = vld [vmem:[#allocation8 + $0x64] sm:$0xf]  ;;  %v3739_v35 = vor.u32 %v4320_v23, %v3736_v24  ;;  %v3831_v11 = vor.u32 %v4346_v46, %v3830_v45  ;;  %v3944_v50 = vld [vmem:[#allocation8 + $0x2f0] sm:$0xf0]  ;;  %v4299_v23 = vld [vmem:[#allocation8 + $0x94] sm:$0xf0] }
  0xeb   :  { %3571 = vmatmul.msk.bf16.vlgmr.msra.gmra.mxu1 %vm1311_vm0, %v4666_v48  ;;  %v4308_v48 = vld [vmem:[#allocation8 + $0xe4] sm:$0xf]  ;;  %v1430_v32 = vpop.f32.mrf.mxu2  ;;  %v3947_v60 = vor.u32 %v4372_v49, %v3944_v50  ;;  %v4022_v46 = vld [vmem:[#allocation8 + $0x380] sm:$0xf] }
  0xec   :  { %2481 = vmatpush.bf16.msrb.mxu1 %v3767_v34  ;;  %v3691_v36 = vor.u32 %v4308_v48, %v3688_v25  ;;  %v4296_v34 = vld [vmem:[#allocation8 + $0x84] sm:$0xf]  ;;  %v3592_v32 = vld [vmem:[#allocation8 + $0x30] sm:$0xf0] }
  0xed   :  { %2493 = vmatpush.bf16.msrb.mxu2 %v3911_v55  ;;  %v3643_v2 = vor.u32 %v4296_v34, %v3640_v61  ;;  %v3704_v55 = vld [vmem:[#allocation8 + $0x110] sm:$0xf0]  ;;  %v3678_v61 = vld [vmem:[#allocation8 + $0xc8] sm:$0xf]  ;;  %v4360_v24 = vld [vmem:[#allocation8 + $0x284] sm:$0xf] }
  0xee   :  { %2468 = vmatpush.bf16.msrb.mxu3 %v3639_v58  ;;  %v3659_v58 = vor.u32 %v4300_v51, %v3656_v52  ;;  %v4311_v52 = vld [vmem:[#allocation8 + $0xf4] sm:$0xf0] }
  0xef   :  { %v3695_v34 = vor.u32 %v4311_v52, %v3694_v47  ;;  %v4394_v47 = vld [vmem:[#allocation8 + $0x38c] sm:$0xf0]  ;;  %v3614_v52 = vld [vmem:[#allocation8 + $0x48] sm:$0xf] }
  0xf0   :  { %2482 = vmatpush.bf16.msrb.mxu1 %v3751_v3  ;;  %v3878_v3 = vld [vmem:[#allocation8 + $0x260] sm:$0xf]  ;;  %v4023_v49 = vor.u32 %v4394_v47, %v4022_v46  ;;  %v4404_v46 = vld [vmem:[#allocation8 + $0x3e4] sm:$0xf]  ;;  %v4072_v47 = vld [vmem:[#allocation8 + $0x3f0] sm:$0xf0] }
  0xf1   :  { %2494 = vmatpush.bf16.msrb.mxu2 %v3895_v62  ;;  %v3879_v12 = vor.u32 %v4358_v4, %v3878_v3  ;;  %v4368_v62 = vld [vmem:[#allocation8 + $0x2c4] sm:$0xf]  ;;  %v4406_v3 = vld [vmem:[#allocation8 + $0x3ec] sm:$0xf0] }
  0xf2   :  { %2469 = vmatpush.bf16.msrb.mxu3 %v3623_v63  ;;  %v4328_v63 = vld [vmem:[#allocation8 + $0x184] sm:$0xf] }
  0xf3   :  { %v3771_v41 = vor.u32 %v4328_v63, %v3768_v0  ;;  %v3928_v63 = vld [vmem:[#allocation8 + $0x2d0] sm:$0xf0]  ;;  %v4307_v0 = vld [vmem:[#allocation8 + $0xd4] sm:$0xf0] }
  0xf4   :  { %2483 = vmatpush.bf16.msrb.mxu1 %v3735_v14  ;;  %v3752_v14 = vld [vmem:[#allocation8 + $0x170] sm:$0xf0] }
  0xf5   :  { %2495 = vmatpush.bf16.msrb.mxu2 %v3879_v12  ;;  %v3755_v48 = vor.u32 %v4324_v13, %v3752_v14  ;;  %v4303_v13 = vld [vmem:[#allocation8 + $0xb4] sm:$0xf0] }
  0xf6   :  { %2470 = vmatpush.bf16.msrb.mxu3 %v3607_v10  ;;  %v3624_v10 = vld [vmem:[#allocation8 + $0x70] sm:$0xf0] }
  0xf7   :  { %v1441_v1 = vpop.f32.mrf.mxu0  ;;  %v3627_v15 = vor.u32 %v4292_v8, %v3624_v10  ;;  %v3662_v8 = vld [vmem:[#allocation8 + $0xa8] sm:$0xf]  ;;  %v4364_v10 = vld [vmem:[#allocation8 + $0x2a4] sm:$0xf] }
  0xf8   :  { %2484 = vmatpush.bf16.msrb.mxu1 %v3719_v21  ;;  %v1454_v7 = vpop.f32.mrf.mxu1  ;;  %v1442_v40 = vadd.f32 %v1441_v1, %v1429_v30  ;;  %v3931_v1 = vor.u32 %v4368_v62, %v3928_v63  ;;  %v3806_v30 = vld [vmem:[#allocation8 + $0x1c8] sm:$0xf] }
  0xf9   :  { %v3598_v63 = vld [vmem:[#allocation8 + $0x28] sm:$0xf] }
  0xfa   :  { %2471 = vmatpush.bf16.msrb.mxu3 %v3591_v17  ;;  %v4354_v17 = vld [vmem:[#allocation8 + $0x24c] sm:$0xf0]  ;;  %v1455_v56 = vadd.f32 %v1454_v7, %v1442_v40  ;;  %v3679_v7 = vor.u32 %v4307_v0, %v3678_v61  ;;  %v4331_v61 = vld [vmem:[#allocation8 + $0x194] sm:$0xf0]  ;;  %v4348_v0 = vld [vmem:[#allocation8 + $0x224] sm:$0xf] }
  0xfb   :  { %v3863_v21 = vor.u32 %v4354_v17, %v3862_v16  ;;  %v4402_v16 = vld [vmem:[#allocation8 + $0x3cc] sm:$0xf0] }
  0xfc   :  { %2485 = vmatpush.bf16.msrb.mxu1 %v3703_v37  ;;  %v4316_v37 = vld [vmem:[#allocation8 + $0x124] sm:$0xf] }
  0xfd   :  { %2496 = vmatpush.bf16.msrb.mxu2 %v3863_v21 }
  0xfe   :  { %2472 = vmatpush.bf16.msrb.mxu3 %v3575_v31  ;;  %v4284_v31 = vld [vmem:[#allocation8 + $0x24] sm:$0xf] }
  0xff   :  { %v1443_v25 = vpop.f32.mrf.mxu0  ;;  %v3595_v43 = vor.u32 %v4284_v31, %v3592_v32  ;;  %v4339_v31 = vld [vmem:[#allocation8 + $0x1d4] sm:$0xf0] }
 0x100   :  { %2530 = vmatpush.bf16.msra.mxu1 %v3819_v44  ;;  %v1467_v22 = vpop.f32.mrf.mxu3  ;;  %v1456_v33 = vpop.f32.mrf.mxu1  ;;  %v3576_v44 = vld [vmem:[#allocation8 + $0x10] sm:$0xf0]  ;;  %v3823_v25 = vor.u32 %v4343_v19, %v3822_v18  ;;  %v4283_v18 = vld [vmem:[#allocation8 + $0x14] sm:$0xf0]  ;;  %v4344_v19 = vld [vmem:[#allocation8 + $0x204] sm:$0xf] }
 0x101   :  { %2473 = vmatmul.bf16.vlgmr.msrb.gmra.mxu3 %v4722_v53  ;;  %v1468_v59 = vadd.f32 %v1467_v22, %v1455_v56  ;;  %v3663_v22 = vor.u32 %v4303_v13, %v3662_v8  ;;  %v4291_v56 = vld [vmem:[#allocation8 + $0x54] sm:$0xf0]  ;;  %v3990_v8 = vld [vmem:[#allocation8 + $0x340] sm:$0xf] }
 0x102   :  { %2517 = vmatpush.bf16.msra.mxu3 %v3691_v36  ;;  %v3847_v36 = vor.u32 %v4350_v9, %v3846_v28  ;;  %v4398_v28 = vld [vmem:[#allocation8 + $0x3ac] sm:$0xf0]  ;;  %v3615_v62 = vor.u32 %v4291_v56, %v3614_v52  ;;  %v3664_v56 = vld [vmem:[#allocation8 + $0xb8] sm:$0xf0] }
 0x103   :  { %v1480_v26 = vpop.f32.mrf.mxu2 }
 0x104   :  { %2531 = vmatpush.bf16.msra.mxu1 %v3803_v54  ;;  %2497 = vmatpush.bf16.msrb.mxu2 %v3847_v36  ;;  %v4312_v54 = vld [vmem:[#allocation8 + $0x104] sm:$0xf]  ;;  %v1481_v5 = vadd.f32 %v1480_v26, %v1468_v59  ;;  %v3896_v26 = vld [vmem:[#allocation8 + $0x290] sm:$0xf0]  ;;  %v3630_v36 = vld [vmem:[#allocation8 + $0x68] sm:$0xf] }
 0x105   :  { %v3899_v32 = vor.u32 %v4360_v24, %v3896_v26  ;;  %v4390_v59 = vld [vmem:[#allocation8 + $0x36c] sm:$0xf0]  ;;  %v4309_v26 = vld [vmem:[#allocation8 + $0xec] sm:$0xf] }
 0x106   :  { %2518 = vmatpush.bf16.msra.mxu3 %v3675_v20  ;;  %v3723_v20 = vor.u32 %v4316_v37, %v3720_v38  ;;  %v4356_v37 = vld [vmem:[#allocation8 + $0x264] sm:$0xf]  ;;  %v3880_v38 = vld [vmem:[#allocation8 + $0x270] sm:$0xf0]  ;;  %v4382_v24 = vld [vmem:[#allocation8 + $0x32c] sm:$0xf0] }
 0x107   :  { %v3883_v45 = vor.u32 %v4356_v37, %v3880_v38 }
 0x108   :  { %2532 = vmatpush.bf16.msra.mxu1 %v3787_v39  ;;  %v1469_v51 = vpop.f32.mrf.mxu3  ;;  %2498 = vmatpush.bf16.msrb.mxu2 %v3831_v11  ;;  %v3707_v39 = vor.u32 %v4312_v54, %v3704_v55  ;;  %v4335_v11 = vld [vmem:[#allocation8 + $0x1b4] sm:$0xf0]  ;;  %v4352_v54 = vld [vmem:[#allocation8 + $0x244] sm:$0xf]  ;;  %v3864_v55 = vld [vmem:[#allocation8 + $0x250] sm:$0xf0] }
 0x10a   :  { %2519 = vmatpush.bf16.msra.mxu3 %v3659_v58  ;;  %v3579_v58 = vor.u32 %v4280_v42, %v3576_v44  ;;  %v4295_v44 = vld [vmem:[#allocation8 + $0x74] sm:$0xf0] }
 0x10b   :  { %v1482_v29 = vpop.f32.mrf.mxu2  ;;  %v3631_v51 = vor.u32 %v4295_v44, %v3630_v36  ;;  %v4305_v36 = vld [vmem:[#allocation8 + $0xcc] sm:$0xf]  ;;  %v3680_v44 = vld [vmem:[#allocation8 + $0xd8] sm:$0xf0] }
 0x10c   :  { %2533 = vmatpush.bf16.msra.mxu1 %v3771_v41  ;;  %2543 = vmatpush.bf16.msra.mxu2 %v3947_v60  ;;  %v3912_v41 = vld [vmem:[#allocation8 + $0x2b0] sm:$0xf0]  ;;  %v4006_v29 = vld [vmem:[#allocation8 + $0x360] sm:$0xf]  ;;  %v3683_v52 = vor.u32 %v4305_v36, %v3680_v44  ;;  %v3600_v44 = vld [vmem:[#allocation8 + $0x38] sm:$0xf0] }
 0x10d   :  { %v3915_v14 = vor.u32 %v4364_v10, %v3912_v41  ;;  %v4386_v10 = vld [vmem:[#allocation8 + $0x34c] sm:$0xf0]  ;;  %v3758_v41 = vld [vmem:[#allocation8 + $0x168] sm:$0xf] }
 0x10e   :  { %2520 = vmatpush.bf16.msra.mxu3 %v3643_v2  ;;  %v4070_v2 = vld [vmem:[#allocation8 + $0x3e0] sm:$0xf]  ;;  %v3991_v13 = vor.u32 %v4386_v10, %v3990_v8  ;;  %v4337_v10 = vld [vmem:[#allocation8 + $0x1cc] sm:$0xf] }
 0x10f   :  { %v4071_v4 = vor.u32 %v4406_v3, %v4070_v2 }
 0x110   :  { %2534 = vmatpush.bf16.msra.mxu1 %v3755_v48  ;;  %2544 = vmatpush.bf16.msra.mxu2 %v3931_v1  ;;  %v1493_v12 = vpop.f32.mrf.mxu3  ;;  %v3646_v48 = vld [vmem:[#allocation8 + $0x88] sm:$0xf]  ;;  %v3848_v1 = vld [vmem:[#allocation8 + $0x230] sm:$0xf0] }
 0x111   :  { %2504 = vmatpush.bf16.msrb.mxu0 %v4071_v4  ;;  %v1494_v17 = vadd.f32 %v1493_v12, %v1481_v5  ;;  %v3647_v33 = vor.u32 %v4299_v23, %v3646_v48  ;;  %v4287_v5 = vld [vmem:[#allocation8 + $0x34] sm:$0xf0]  ;;  %v3974_v23 = vld [vmem:[#allocation8 + $0x320] sm:$0xf] }
 0x112   :  { %2521 = vmatpush.bf16.msra.mxu3 %v3627_v15  ;;  %v4054_v15 = vld [vmem:[#allocation8 + $0x3c0] sm:$0xf]  ;;  %v4327_v12 = vld [vmem:[#allocation8 + $0x174] sm:$0xf0] }
 0x113   :  { %v4055_v57 = vor.u32 %v4402_v16, %v4054_v15  ;;  %v1680_v21 = vmax.f32 %v1494_v17, 0.0  ;;  %v3582_v15 = vld [vmem:[#allocation8 + $0x8] sm:$0xf]  ;;  %v3599_v17 = vor.u32 %v4287_v5, %v3598_v63  ;;  %v3759_v48 = vor.u32 %v4327_v12, %v3758_v41  ;;  %v4396_v5 = vld [vmem:[#allocation8 + $0x3a4] sm:$0xf] }
 0x114   :  { %2535 = vmatpush.bf16.msra.mxu1 %v3739_v35  ;;  %2545 = vmatpush.bf16.msra.mxu2 %v3915_v14 }
 0x115   :  { %2505 = vmatpush.bf16.msrb.mxu0 %v4055_v57  ;;  %v4729_v9 = vpack.c.bf16 %v1680_v21, %v1680_v21  ;;  %v3832_v57 = vld [vmem:[#allocation8 + $0x210] sm:$0xf0]  ;;  %v3742_v21 = vld [vmem:[#allocation8 + $0x148] sm:$0xf] }
 0x116   :  { %2522 = vmatpush.bf16.msra.mxu3 %v3611_v27  ;;  %v4038_v27 = vld [vmem:[#allocation8 + $0x3a0] sm:$0xf] }
 0x117   :  { %v4039_v35 = vor.u32 %v4398_v28, %v4038_v27  ;;  %2486 = vmatmul.bf16.vlgmr.msrb.gmra.mxu1 %v4729_v9  ;;  %v4732_v42 = vpop.f32.mrf.mxu0  ;;  %v3696_v27 = vld [vmem:[#allocation8 + $0xf8] sm:$0xf0]  ;;  %v3975_v28 = vor.u32 %v4382_v24, %v3974_v23  ;;  %v4289_v23 = vld [vmem:[#allocation8 + $0x4c] sm:$0xf] }
 0x118   :  { %2536 = vmatpush.bf16.msra.mxu1 %v3723_v20  ;;  %v1495_v40 = vpop.f32.mrf.mxu3  ;;  %2546 = vmatpush.bf16.msra.mxu2 %v3899_v32  ;;  %v3790_v20 = vld [vmem:[#allocation8 + $0x1a8] sm:$0xf]  ;;  %v4734_v50 = vpop.f32.mrf.mxu1  ;;  %v4319_v32 = vld [vmem:[#allocation8 + $0x134] sm:$0xf0] }
 0x119   :  { %2506 = vmatpush.bf16.msrb.mxu0 %v4039_v35  ;;  %v3791_v60 = vor.u32 %v4335_v11, %v3790_v20  ;;  %v3958_v40 = vld [vmem:[#allocation8 + $0x300] sm:$0xf]  ;;  %v301_v20 = vperm.slane %v4702_v6, 2 }
 0x11a   :  { %2523 = vmatpush.bf16.msra.mxu3 %v3595_v43  ;;  %v3807_v43 = vor.u32 %v4339_v31, %v3806_v30  ;;  %v3583_v30 = vor.u32 %v4283_v18, %v3582_v15  ;;  %v3726_v31 = vld [vmem:[#allocation8 + $0x128] sm:$0xf]  ;;  %v4293_v15 = vld [vmem:[#allocation8 + $0x6c] sm:$0xf]  ;;  %v4392_v18 = vld [vmem:[#allocation8 + $0x384] sm:$0xf] }
 0x11c   :  { %2537 = vmatpush.bf16.msra.mxu1 %v3707_v39  ;;  %2547 = vmatpush.bf16.msra.mxu2 %v3883_v45  ;;  %v4007_v39 = vor.u32 %v4390_v59, %v4006_v29  ;;  %v4056_v29 = vld [vmem:[#allocation8 + $0x3d0] sm:$0xf0]  ;;  %v1507_v59 = vadd.f32 %v4734_v50, %v301_v20  ;;  %v3808_v50 = vld [vmem:[#allocation8 + $0x1d8] sm:$0xf0]  ;;  %v4325_v20 = vld [vmem:[#allocation8 + $0x16c] sm:$0xf] }
 0x11d   :  { %2507 = vmatpush.bf16.msrb.mxu0 %v4023_v49  ;;  %v4075_v49 = vor.u32 %v4404_v46, %v4072_v47  ;;  %v3992_v46 = vld [vmem:[#allocation8 + $0x350] sm:$0xf0] }
 0x11e   :  { %2524 = vmatpush.bf16.msra.mxu3 %v3579_v58  ;;  %v3867_v58 = vor.u32 %v4352_v54, %v3864_v55  ;;  %v3710_v54 = vld [vmem:[#allocation8 + $0x108] sm:$0xf]  ;;  %v4315_v55 = vld [vmem:[#allocation8 + $0x114] sm:$0xf0] }
 0x11f   :  { %v1534_v3 = vpop.f32.mrf.mxu0 }
 0x120   :  { %2582 = vmatpush.bf16.msrb.mxu1 %v3823_v25  ;;  %2548 = vmatpush.bf16.msra.mxu2 %v3867_v58  ;;  %v1508_v16 = vpop.f32.mrf.mxu1  ;;  %v4323_v25 = vld [vmem:[#allocation8 + $0x154] sm:$0xf0]  ;;  %v4400_v58 = vld [vmem:[#allocation8 + $0x3c4] sm:$0xf] }
 0x121   :  { %2525 = vmatmul.bf16.vlgmr.msra.gmra.mxu3 %v4722_v53  ;;  %2508 = vmatpush.bf16.msrb.mxu0 %v4007_v39  ;;  %v3743_v35 = vor.u32 %v4323_v25, %v3742_v21  ;;  %v4059_v39 = vor.u32 %v4400_v58, %v4056_v29  ;;  %v3811_v16 = vor.u32 %v4337_v10, %v3808_v50  ;;  %v3792_v21 = vld [vmem:[#allocation8 + $0x1b8] sm:$0xf0]  ;;  %v4380_v29 = vld [vmem:[#allocation8 + $0x324] sm:$0xf]  ;;  %v3960_v10 = vld [vmem:[#allocation8 + $0x310] sm:$0xf0] }
 0x122   :  { %2569 = vmatpush.bf16.msrb.mxu3 %v3695_v34  ;;  %v3774_v34 = vld [vmem:[#allocation8 + $0x188] sm:$0xf]  ;;  %v3616_v25 = vld [vmem:[#allocation8 + $0x58] sm:$0xf0]  ;;  %v4317_v50 = vld [vmem:[#allocation8 + $0x12c] sm:$0xf] }
 0x123   :  { %v3775_v4 = vor.u32 %v4331_v61, %v3774_v34  ;;  %v4738_v14 = vpop.f32.mrf.mxu2  ;;  %v4341_v34 = vld [vmem:[#allocation8 + $0x1ec] sm:$0xf]  ;;  %v3824_v61 = vld [vmem:[#allocation8 + $0x1f8] sm:$0xf0] }
 0x124   :  { %2583 = vmatpush.bf16.msrb.mxu1 %v3807_v43  ;;  %v4736_v2 = vpop.f32.mrf.mxu3  ;;  %v4378_v43 = vld [vmem:[#allocation8 + $0x30c] sm:$0xf0]  ;;  %v3827_v3 = vor.u32 %v4341_v34, %v3824_v61  ;;  %v3584_v58 = vld [vmem:[#allocation8 + $0x18] sm:$0xf0]  ;;  %v4321_v61 = vld [vmem:[#allocation8 + $0x14c] sm:$0xf] }
 0x125   :  { %2509 = vmatpush.bf16.msrb.mxu0 %v3991_v13  ;;  %v3959_v45 = vor.u32 %v4378_v43, %v3958_v40  ;;  %v1520_v8 = vadd.f32 %v4736_v2, %v1507_v59  ;;  %v3976_v59 = vld [vmem:[#allocation8 + $0x330] sm:$0xf0] }
 0x126   :  { %2570 = vmatpush.bf16.msrb.mxu3 %v3679_v7  ;;  %v3851_v7 = vor.u32 %v4348_v0, %v3848_v1  ;;  %v4297_v0 = vld [vmem:[#allocation8 + $0x8c] sm:$0xf] }
 0x127   :  { %2538 = vmatmul.bf16.vlgmr.msra.gmra.mxu1 %v4729_v9  ;;  %v4741_v38 = vpop.f32.mrf.mxu0 }
 0x128   :  { %2584 = vmatpush.bf16.msrb.mxu1 %v3791_v60  ;;  %2549 = vmatpush.bf16.msra.mxu2 %v3851_v7  ;;  %v4301_v60 = vld [vmem:[#allocation8 + $0xac] sm:$0xf]  ;;  %v4040_v7 = vld [vmem:[#allocation8 + $0x3b0] sm:$0xf0] }
 0x129   :  { %2510 = vmatpush.bf16.msrb.mxu0 %v3975_v28  ;;  %v3667_v63 = vor.u32 %v4301_v60, %v3664_v56  ;;  %v4043_v41 = vor.u32 %v4396_v5, %v4040_v7  ;;  %v4281_v60 = vld [vmem:[#allocation8 + $0xc] sm:$0xf] }
 0x12a   :  { %2571 = vmatpush.bf16.msrb.mxu3 %v3663_v22  ;;  %v3835_v22 = vor.u32 %v4344_v19, %v3832_v57  ;;  %v4024_v19 = vld [vmem:[#allocation8 + $0x390] sm:$0xf0]  ;;  %v1533_v57 = vadd.f32 %v4732_v42, %v1520_v8  ;;  %v4376_v8 = vld [vmem:[#allocation8 + $0x304] sm:$0xf] }
 0x12b   :  { %v1547_v11 = vpop.f32.mrf.mxu2  ;;  %v4027_v2 = vor.u32 %v4392_v18, %v4024_v19  ;;  %v4313_v19 = vld [vmem:[#allocation8 + $0x10c] sm:$0xf] }
 0x12c   :  { %2585 = vmatpush.bf16.msrb.mxu1 %v3775_v4  ;;  %v1521_v37 = vpop.f32.mrf.mxu3  ;;  %2550 = vmatpush.bf16.msra.mxu2 %v3835_v22  ;;  %v3648_v4 = vld [vmem:[#allocation8 + $0x98] sm:$0xf0]  ;;  %v1546_v28 = vadd.f32 %v4738_v14, %v1533_v57 }
 0x12d   :  { %2511 = vmatpush.bf16.msrb.mxu0 %v3959_v45  ;;  %v3651_v13 = vor.u32 %v4297_v0, %v3648_v4  ;;  %v4285_v37 = vld [vmem:[#allocation8 + $0x2c] sm:$0xf]  ;;  %v4384_v45 = vld [vmem:[#allocation8 + $0x344] sm:$0xf]  ;;  %v3760_v14 = vld [vmem:[#allocation8 + $0x178] sm:$0xf0] }
 0x12e   :  { %2572 = vmatpush.bf16.msrb.mxu3 %v3647_v33  ;;  %v3699_v33 = vor.u32 %v4309_v26, %v3696_v27  ;;  %v4388_v26 = vld [vmem:[#allocation8 + $0x364] sm:$0xf]  ;;  %v4008_v27 = vld [vmem:[#allocation8 + $0x370] sm:$0xf0]  ;;  %v3763_v56 = vor.u32 %v4325_v20, %v3760_v14  ;;  %v4371_v4 = vld [vmem:[#allocation8 + $0x2d4] sm:$0xf0] }
 0x12f   :  { %v1586_v1 = vpop.f32.mrf.mxu0  ;;  %v4011_v42 = vor.u32 %v4388_v26, %v4008_v27  ;;  %v3712_v57 = vld [vmem:[#allocation8 + $0x118] sm:$0xf0]  ;;  %v4359_v26 = vld [vmem:[#allocation8 + $0x274] sm:$0xf0]  ;;  %v4373_v14 = vld [vmem:[#allocation8 + $0x2ec] sm:$0xf] }
 0x130   :  { %2586 = vmatpush.bf16.msrb.mxu1 %v3759_v48  ;;  %v4333_v48 = vld [vmem:[#allocation8 + $0x1ac] sm:$0xf] }
 0x131   :  { %2556 = vmatpush.bf16.msra.mxu0 %v4075_v49  ;;  %v3795_v24 = vor.u32 %v4333_v48, %v3792_v21  ;;  %v3995_v49 = vor.u32 %v4384_v45, %v3992_v46  ;;  %v3902_v21 = vld [vmem:[#allocation8 + $0x288] sm:$0xf] }
 0x132   :  { %2573 = vmatpush.bf16.msrb.mxu3 %v3631_v51  ;;  %v3727_v51 = vor.u32 %v4319_v32, %v3726_v31  ;;  %v3776_v31 = vld [vmem:[#allocation8 + $0x198] sm:$0xf0] }
 0x134   :  { %2587 = vmatpush.bf16.msrb.mxu1 %v3743_v35 }
 0x135   :  { %2557 = vmatpush.bf16.msra.mxu0 %v4059_v39  ;;  %v3744_v39 = vld [vmem:[#allocation8 + $0x158] sm:$0xf0] }
 0x136   :  { %2574 = vmatpush.bf16.msrb.mxu3 %v3615_v62  ;;  %v3711_v62 = vor.u32 %v4315_v55, %v3710_v54  ;;  %v3950_v54 = vld [vmem:[#allocation8 + $0x2e8] sm:$0xf]  ;;  %v4375_v55 = vld [vmem:[#allocation8 + $0x2f4] sm:$0xf0]  ;;  %v3747_v5 = vor.u32 %v4321_v61, %v3744_v39 }
 0x137   :  { %v3951_v0 = vor.u32 %v4375_v55, %v3950_v54  ;;  %v4369_v55 = vld [vmem:[#allocation8 + $0x2cc] sm:$0xf] }
 0x138   :  { %2588 = vmatpush.bf16.msrb.mxu1 %v3727_v51  ;;  %v1558_v12 = vpop.f32.mrf.mxu1 }
 0x139   :  { %2558 = vmatpush.bf16.msra.mxu0 %v4043_v41  ;;  %v1559_v35 = vadd.f32 %v1558_v12, %v1546_v28  ;;  %v3728_v41 = vld [vmem:[#allocation8 + $0x138] sm:$0xf0] }
 0x13a   :  { %2575 = vmatpush.bf16.msrb.mxu3 %v3599_v17  ;;  %v3632_v17 = vld [vmem:[#allocation8 + $0x78] sm:$0xf0]  ;;  %v3731_v18 = vor.u32 %v4317_v50, %v3728_v41  ;;  %v4046_v41 = vld [vmem:[#allocation8 + $0x3a8] sm:$0xf] }
 0x13b   :  { %v3635_v22 = vor.u32 %v4293_v15, %v3632_v17  ;;  %v4750_v32 = vpop.f32.mrf.mxu0  ;;  %v4367_v17 = vld [vmem:[#allocation8 + $0x2b4] sm:$0xf0]  ;;  %v3904_v50 = vld [vmem:[#allocation8 + $0x298] sm:$0xf0] }
 0x13c   :  { %2589 = vmatpush.bf16.msrb.mxu1 %v3711_v62 }
 0x13d   :  { %2559 = vmatpush.bf16.msra.mxu0 %v4027_v2  ;;  %v4363_v2 = vld [vmem:[#allocation8 + $0x294] sm:$0xf0] }
 0x13e   :  { %2576 = vmatpush.bf16.msrb.mxu3 %v3583_v30  ;;  %v4329_v30 = vld [vmem:[#allocation8 + $0x18c] sm:$0xf] }
 0x13f   :  { %2590 = vmatmul.bf16.vlgmr.msrb.gmra.mxu1 %v4729_v9  ;;  %v3779_v43 = vor.u32 %v4329_v30, %v3776_v31  ;;  %v3870_v31 = vld [vmem:[#allocation8 + $0x248] sm:$0xf] }
 0x140   :  { %2634 = vmatpush.bf16.msra.mxu1 %v3827_v3  ;;  %v1560_v36 = vpop.f32.mrf.mxu1  ;;  %v3934_v3 = vld [vmem:[#allocation8 + $0x2c8] sm:$0xf] }
 0x141   :  { %2577 = vmatmul.bf16.vlgmr.msrb.gmra.mxu3 %v4722_v53  ;;  %2560 = vmatpush.bf16.msra.mxu0 %v4011_v42  ;;  %v3935_v15 = vor.u32 %v4371_v4, %v3934_v3  ;;  %v4351_v36 = vld [vmem:[#allocation8 + $0x234] sm:$0xf0]  ;;  %v4062_v3 = vld [vmem:[#allocation8 + $0x3c8] sm:$0xf] }
 0x142   :  { %2621 = vmatpush.bf16.msra.mxu3 %v3699_v33  ;;  %v3619_v33 = vor.u32 %v4289_v23, %v3616_v25  ;;  %v3715_v23 = vor.u32 %v4313_v19, %v3712_v57  ;;  %v3886_v25 = vld [vmem:[#allocation8 + $0x268] sm:$0xf]  ;;  %v4403_v4 = vld [vmem:[#allocation8 + $0x3d4] sm:$0xf0] }
 0x143   :  { %v1597_v11 = vpop.f32.mrf.mxu2  ;;  %v1612_v62 = vpop.f32.mrf.mxu0  ;;  %v3887_v30 = vor.u32 %v4359_v26, %v3886_v25  ;;  %v4395_v19 = vld [vmem:[#allocation8 + $0x394] sm:$0xf0]  ;;  %v4349_v26 = vld [vmem:[#allocation8 + $0x22c] sm:$0xf] }
 0x144   :  { %2635 = vmatpush.bf16.msra.mxu1 %v3811_v16  ;;  %v1571_v40 = vpop.f32.mrf.mxu3  ;;  %v3918_v16 = vld [vmem:[#allocation8 + $0x2a8] sm:$0xf] }
 0x145   :  { %v1572_v47 = vadd.f32 %v1571_v40, %v1559_v35  ;;  %2561 = vmatpush.bf16.msra.mxu0 %v3995_v49  ;;  %v3919_v48 = vor.u32 %v4367_v17, %v3918_v16  ;;  %v4357_v16 = vld [vmem:[#allocation8 + $0x26c] sm:$0xf]  ;;  %v3888_v17 = vld [vmem:[#allocation8 + $0x278] sm:$0xf0] }
 0x146   :  { %2622 = vmatpush.bf16.msra.mxu3 %v3683_v52  ;;  %v3603_v52 = vor.u32 %v4285_v37, %v3600_v44  ;;  %v3891_v57 = vor.u32 %v4357_v16, %v3888_v17 }
 0x147   :  { %v1585_v51 = vadd.f32 %v4741_v38, %v1572_v47  ;;  %v3587_v38 = vor.u32 %v4281_v60, %v3584_v58  ;;  %v3838_v47 = vld [vmem:[#allocation8 + $0x208] sm:$0xf]  ;;  %v3936_v60 = vld [vmem:[#allocation8 + $0x2d8] sm:$0xf0] }
 0x148   :  { %2636 = vmatpush.bf16.msra.mxu1 %v3795_v24  ;;  %v3903_v24 = vor.u32 %v4363_v2, %v3902_v21  ;;  %v3939_v39 = vor.u32 %v4369_v55, %v3936_v60  ;;  %v4353_v21 = vld [vmem:[#allocation8 + $0x24c] sm:$0xf]  ;;  %v3872_v2 = vld [vmem:[#allocation8 + $0x258] sm:$0xf0]  ;;  %v1815_v60 = vld [vmem:[#allocation10] sm:$0xf] }
 0x149   :  { %v1681_v34 = vmax.f32 %v1585_v51, 0.0  ;;  %v4032_v55 = vld [vmem:[#allocation8 + $0x398] sm:$0xf0] }
 0x14a   :  { %2623 = vmatpush.bf16.msra.mxu3 %v3667_v63  ;;  %v3979_v63 = vor.u32 %v4380_v29, %v3976_v59  ;;  %v4078_v29 = vld [vmem:[#allocation8 + $0x3e8] sm:$0xf]  ;;  %v4407_v59 = vld [vmem:[#allocation8 + $0x3f4] sm:$0xf0] }
 0x14b   :  { %v4753_v1 = vpack.c.bf16 %v1681_v34, %v1681_v34  ;;  %v1599_v12 = vpop.f32.mrf.mxu2  ;;  %v4079_v62 = vor.u32 %v4407_v59, %v4078_v29  ;;  %v4389_v29 = vld [vmem:[#allocation8 + $0x36c] sm:$0xf]  ;;  %v4016_v59 = vld [vmem:[#allocation8 + $0x378] sm:$0xf0] }
 0x14c   :  { %2637 = vmatpush.bf16.msra.mxu1 %v3779_v43  ;;  %v1573_v7 = vpop.f32.mrf.mxu3  ;;  %2562 = vmatpush.bf16.msra.mxu0 %v3979_v63  ;;  %v4365_v63 = vld [vmem:[#allocation8 + $0x2ac] sm:$0xf]  ;;  %v4399_v12 = vld [vmem:[#allocation8 + $0x3b4] sm:$0xf0] }
 0x14d   :  { %2499 = vmatmul.bf16.vlgmr.msrb.gmra.mxu2 %v4753_v1 }
 0x14e   :  { %2624 = vmatpush.bf16.msra.mxu3 %v3651_v13  ;;  %v3963_v13 = vor.u32 %v4376_v8, %v3960_v10  ;;  %2595 = vmatpush.bf16.msrb.mxu2 %v3951_v0  ;;  %v3920_v0 = vld [vmem:[#allocation8 + $0x2b8] sm:$0xf0]  ;;  %v4063_v8 = vor.u32 %v4403_v4, %v4062_v3  ;;  %v4361_v10 = vld [vmem:[#allocation8 + $0x28c] sm:$0xf] }
 0x14f   :  { %v4381_v4 = vld [vmem:[#allocation8 + $0x32c] sm:$0xf] }
 0x150   :  { %2638 = vmatpush.bf16.msra.mxu1 %v3763_v56  ;;  %2563 = vmatpush.bf16.msra.mxu0 %v3963_v13  ;;  %v3907_v13 = vor.u32 %v4361_v10, %v3904_v50  ;;  %v3968_v10 = vld [vmem:[#allocation8 + $0x318] sm:$0xf0] }
 0x152   :  { %2625 = vmatpush.bf16.msra.mxu3 %v3635_v22  ;;  %2596 = vmatpush.bf16.msrb.mxu2 %v3935_v15  ;;  %v302_v22 = vperm.slane %v4702_v6, 3  ;;  %v4047_v15 = vor.u32 %v4399_v12, %v4046_v41 }
 0x154   :  { %2639 = vmatpush.bf16.msra.mxu1 %v3747_v5  ;;  %v1598_v27 = vadd.f32 %v1597_v11, %v302_v22  ;;  %v3952_v11 = vld [vmem:[#allocation8 + $0x2f8] sm:$0xf0]  ;;  %v3923_v5 = vor.u32 %v4365_v63, %v3920_v0  ;;  %v4014_v22 = vld [vmem:[#allocation8 + $0x368] sm:$0xf] }
 0x156   :  { %2626 = vmatpush.bf16.msra.mxu3 %v3619_v33  ;;  %2597 = vmatpush.bf16.msrb.mxu2 %v3919_v48  ;;  %v1611_v42 = vadd.f32 %v4750_v32, %v1598_v27  ;;  %v3854_v33 = vld [vmem:[#allocation8 + $0x228] sm:$0xf]  ;;  %v3856_v27 = vld [vmem:[#allocation8 + $0x238] sm:$0xf0] }
 0x157   :  { %v3855_v46 = vor.u32 %v4351_v36, %v3854_v33  ;;  %v3982_v33 = vld [vmem:[#allocation8 + $0x328] sm:$0xf]  ;;  %v4383_v36 = vld [vmem:[#allocation8 + $0x334] sm:$0xf0] }
 0x158   :  { %2640 = vmatpush.bf16.msra.mxu1 %v3731_v18  ;;  %v1623_v28 = vpop.f32.mrf.mxu1  ;;  %v4030_v18 = vld [vmem:[#allocation8 + $0x388] sm:$0xf] }
 0x159   :  { %v1624_v37 = vadd.f32 %v1623_v28, %v1611_v42  ;;  %v4031_v48 = vor.u32 %v4395_v19, %v4030_v18  ;;  %v3998_v28 = vld [vmem:[#allocation8 + $0x348] sm:$0xf]  ;;  %v1819_v19 = vperm.slane %v1815_v60, 2 }
 0x15a   :  { %2627 = vmatpush.bf16.msra.mxu3 %v3603_v52  ;;  %2598 = vmatpush.bf16.msrb.mxu2 %v3903_v24  ;;  %v3955_v52 = vor.u32 %v4373_v14, %v3952_v11  ;;  %v3875_v24 = vor.u32 %v4353_v21, %v3872_v2  ;;  %v4401_v14 = vld [vmem:[#allocation8 + $0x3cc] sm:$0xf]  ;;  %v4064_v11 = vld [vmem:[#allocation8 + $0x3d8] sm:$0xf0] }
 0x15b   :  { %v1662_v6 = vpop.f32.mrf.mxu0 }
 0x15c   :  { %2641 = vmatpush.bf16.msra.mxu1 %v3715_v23  ;;  %v4391_v23 = vld [vmem:[#allocation8 + $0x374] sm:$0xf0] }
 0x15d   :  { %2551 = vmatmul.bf16.vlgmr.msra.gmra.mxu2 %v4753_v1  ;;  %v4015_v25 = vor.u32 %v4391_v23, %v4014_v22 }
 0x15e   :  { %2628 = vmatpush.bf16.msra.mxu3 %v3587_v38  ;;  %2599 = vmatpush.bf16.msrb.mxu2 %v3887_v30  ;;  %v4387_v30 = vld [vmem:[#allocation8 + $0x354] sm:$0xf0] }
 0x15f   :  { %2642 = vmatmul.bf16.vlgmr.msra.gmra.mxu1 %v4729_v9  ;;  %v4347_v9 = vld [vmem:[#allocation8 + $0x214] sm:$0xf0]  ;;  %v3999_v42 = vor.u32 %v4387_v30, %v3998_v28 }
 0x160   :  { %v1625_v40 = vpop.f32.mrf.mxu1  ;;  %v3839_v51 = vor.u32 %v4347_v9, %v3838_v47  ;;  %v4080_v47 = vld [vmem:[#allocation8 + $0x3f8] sm:$0xf0] }
 0x161   :  { %2629 = vmatmul.bf16.vlgmr.msra.gmra.mxu3 %v4722_v53  ;;  %v4355_v53 = vld [vmem:[#allocation8 + $0x254] sm:$0xf0]  ;;  %v3983_v40 = vor.u32 %v4383_v36, %v3982_v33 }
 0x162   :  { %v3871_v35 = vor.u32 %v4355_v53, %v3870_v31  ;;  %v3859_v53 = vor.u32 %v4349_v26, %v3856_v27 }
 0x163   :  { %v1649_v45 = vpop.f32.mrf.mxu2  ;;  %v1664_v32 = vpop.f32.mrf.mxu0 }
 0x164   :  { %v1636_v43 = vpop.f32.mrf.mxu3  ;;  %2600 = vmatpush.bf16.msrb.mxu2 %v3871_v35  ;;  %v3840_v35 = vld [vmem:[#allocation8 + $0x218] sm:$0xf0]  ;;  %v4067_v32 = vor.u32 %v4401_v14, %v4064_v11 }
 0x165   :  { %v1637_v44 = vadd.f32 %v1636_v43, %v1624_v37  ;;  %v3966_v43 = vld [vmem:[#allocation8 + $0x308] sm:$0xf] }
 0x167   :  { %v1650_v20 = vadd.f32 %v1649_v45, %v1637_v44  ;;  %v4379_v44 = vld [vmem:[#allocation8 + $0x314] sm:$0xf0] }
 0x168   :  { %2601 = vmatpush.bf16.msrb.mxu2 %v3855_v46  ;;  %v1675_v54 = vpop.f32.mrf.mxu1  ;;  %v4405_v46 = vld [vmem:[#allocation8 + $0x3ec] sm:$0xf]  ;;  %v3967_v9 = vor.u32 %v4379_v44, %v3966_v43 }
 0x169   :  { %v1663_v49 = vadd.f32 %v1662_v6, %v1650_v20  ;;  %v4345_v6 = vld [vmem:[#allocation8 + $0x20c] sm:$0xf]  ;;  %v4083_v20 = vor.u32 %v4405_v46, %v4080_v47 }
 0x16a   :  { %v3843_v37 = vor.u32 %v4345_v6, %v3840_v35 }
 0x16b   :  { %v1676_v56 = vadd.f32 %v1675_v54, %v1663_v49  ;;  %v1651_v34 = vpop.f32.mrf.mxu2  ;;  %v4397_v49 = vld [vmem:[#allocation8 + $0x3ac] sm:$0xf] }
 0x16c   :  { %v1638_v58 = vpop.f32.mrf.mxu3  ;;  %2602 = vmatpush.bf16.msrb.mxu2 %v3839_v51  ;;  %v4048_v51 = vld [vmem:[#allocation8 + $0x3b8] sm:$0xf0]  ;;  %v4393_v54 = vld [vmem:[#allocation8 + $0x38c] sm:$0xf] }
 0x16d   :  { %v1682_v61 = vmax.f32 %v1676_v56, 0.0  ;;  %v4035_v56 = vor.u32 %v4393_v54, %v4032_v55  ;;  %v1817_v58 = vperm.slane %v1815_v60, 0 }
 0x16f   :  { %v4761_v38 = vpack.c.bf16 %v1682_v61, %v1682_v61  ;;  %2603 = vmatmul.bf16.vlgmr.msrb.gmra.mxu2 %v4753_v1  ;;  %v4385_v61 = vld [vmem:[#allocation8 + $0x34c] sm:$0xf] }
 0x170   :  { %2647 = vmatpush.bf16.msra.mxu2 %v3955_v52  ;;  %v1677_v7 = vpop.f32.mrf.mxu1  ;;  %v4051_v52 = vor.u32 %v4397_v49, %v4048_v51 }
 0x171   :  { %2512 = vmatmul.bf16.vlgmr.msrb.gmra.mxu0 %v4761_v38 }
 0x172   :  { %2608 = vmatpush.bf16.msrb.mxu0 %v4079_v62 }
 0x174   :  { %2648 = vmatpush.bf16.msra.mxu2 %v3939_v39  ;;  %v4000_v39 = vld [vmem:[#allocation8 + $0x358] sm:$0xf0] }
 0x175   :  { %v4003_v3 = vor.u32 %v4385_v61, %v4000_v39 }
 0x176   :  { %2609 = vmatpush.bf16.msrb.mxu0 %v4063_v8  ;;  %v4377_v8 = vld [vmem:[#allocation8 + $0x30c] sm:$0xf] }
 0x177   :  { %v3971_v12 = vor.u32 %v4377_v8, %v3968_v10 }
 0x178   :  { %2649 = vmatpush.bf16.msra.mxu2 %v3923_v5  ;;  %v3984_v5 = vld [vmem:[#allocation8 + $0x338] sm:$0xf0] }
 0x179   :  { %v3987_v7 = vor.u32 %v4381_v4, %v3984_v5 }
 0x17a   :  { %2610 = vmatpush.bf16.msrb.mxu0 %v4047_v15 }
 0x17c   :  { %2650 = vmatpush.bf16.msra.mxu2 %v3907_v13  ;;  %v1818_v13 = vperm.slane %v1815_v60, 1 }
 0x17e   :  { %2611 = vmatpush.bf16.msrb.mxu0 %v4031_v48 }
 0x180   :  { %2651 = vmatpush.bf16.msra.mxu2 %v3891_v57 }
 0x181   :  { %2564 = vmatmul.bf16.vlgmr.msra.gmra.mxu0 %v4761_v38 }
 0x182   :  { %2612 = vmatpush.bf16.msrb.mxu0 %v4015_v25  ;;  %v1820_v25 = vperm.slane %v1815_v60, 3 }
 0x184   :  { %v2474_v31 = vpop.f32.mrf.mxu3  ;;  %2652 = vmatpush.bf16.msra.mxu2 %v3875_v24 }
 0x185   :  { %v2475_v34 = vadd.f32 %v2474_v31, %v1817_v58 }
 0x186   :  { %2613 = vmatpush.bf16.msrb.mxu0 %v3999_v42 }
 0x188   :  { %2653 = vmatpush.bf16.msra.mxu2 %v3859_v53 }
 0x18a   :  { %2614 = vmatpush.bf16.msrb.mxu0 %v3983_v40 }
 0x18c   :  { %v2476_v45 = vpop.f32.mrf.mxu3  ;;  %2654 = vmatpush.bf16.msra.mxu2 %v3843_v37 }
 0x18e   :  { %2615 = vmatpush.bf16.msrb.mxu0 %v3967_v9 }
 0x18f   :  { %2655 = vmatmul.bf16.vlgmr.msra.gmra.mxu2 %v4753_v1  ;;  %v4019_v1 = vor.u32 %v4389_v29, %v4016_v59 }
 0x191   :  { %2616 = vmatmul.bf16.vlgmr.msrb.gmra.mxu0 %v4761_v38 }
 0x192   :  { %2660 = vmatpush.bf16.msra.mxu0 %v4083_v20 }
 0x194   :  { %v2487_v62 = vpop.f32.mrf.mxu1 }
 0x195   :  { %v2488_v0 = vadd.f32 %v2487_v62, %v2475_v34 }
 0x196   :  { %2661 = vmatpush.bf16.msra.mxu0 %v4067_v32 }
 0x19a   :  { %2662 = vmatpush.bf16.msra.mxu0 %v4051_v52 }
 0x19c   :  { %v2489_v50 = vpop.f32.mrf.mxu1 }
 0x19e   :  { %2663 = vmatpush.bf16.msra.mxu0 %v4035_v56 }
 0x1a2   :  { %2664 = vmatpush.bf16.msra.mxu0 %v4019_v1 }
 0x1a4   :  { %v2526_v63 = vpop.f32.mrf.mxu3  ;;  %v2539_v16 = vpop.f32.mrf.mxu1 }
 0x1a5   :  { %v2527_v15 = vadd.f32 %v2526_v63, %v1818_v13 }
 0x1a6   :  { %2665 = vmatpush.bf16.msra.mxu0 %v4003_v3 }
 0x1a7   :  { %v2540_v17 = vadd.f32 %v2539_v16, %v2527_v15 }
 0x1aa   :  { %2666 = vmatpush.bf16.msra.mxu0 %v3987_v7 }
 0x1ac   :  { %v2528_v41 = vpop.f32.mrf.mxu3  ;;  %v2541_v18 = vpop.f32.mrf.mxu1 }
 0x1ae   :  { %2667 = vmatpush.bf16.msra.mxu0 %v3971_v12 }
 0x1b1   :  { %2668 = vmatmul.bf16.vlgmr.msra.gmra.mxu0 %v4761_v38 }
 0x1bc   :  { %v2591_v21 = vpop.f32.mrf.mxu1 }
 0x1c4   :  { %v2578_v57 = vpop.f32.mrf.mxu3  ;;  %v2593_v23 = vpop.f32.mrf.mxu1 }
 0x1c5   :  { %v2579_v48 = vadd.f32 %v2578_v57, %v1819_v19 }
 0x1c7   :  { %v2592_v2 = vadd.f32 %v2591_v21, %v2579_v48 }
 0x1cc   :  { %v2580_v22 = vpop.f32.mrf.mxu3 }
 0x1d0   :  { %v2500_v24 = vpop.f32.mrf.mxu2 }
 0x1d1   :  { %v2501_v35 = vadd.f32 %v2500_v24, %v2488_v0 }
 0x1d8   :  { %v2502_v30 = vpop.f32.mrf.mxu2 }
 0x1dc   :  { %v2643_v28 = vpop.f32.mrf.mxu1 }
 0x1e0   :  { %v2552_v6 = vpop.f32.mrf.mxu2 }
 0x1e1   :  { %v2553_v47 = vadd.f32 %v2552_v6, %v2540_v17 }
 0x1e4   :  { %v2630_v26 = vpop.f32.mrf.mxu3  ;;  %v2645_v42 = vpop.f32.mrf.mxu1 }
 0x1e5   :  { %v2631_v27 = vadd.f32 %v2630_v26, %v1820_v25 }
 0x1e7   :  { %v4769_v31 = vadd.f32 %v2643_v28, %v2631_v27 }
 0x1e8   :  { %v2554_v38 = vpop.f32.mrf.mxu2 }
 0x1ec   :  { %v2632_v53 = vpop.f32.mrf.mxu3 }
 0x1ee   :  { %v2513_v33 = vpop.f32.mrf.mxu0 }
 0x1ef   :  { %v2514_v36 = vadd.f32 %v2513_v33, %v2501_v35 }
 0x1f1   :  { %2673 = vst [vmem:[#allocation11] sm:$0xff] %v2514_v36  ;;  %v2701_v40 = vmul.f32 %v2514_v36, %v2514_v36  ;;  %v2677_v46 = vrot.slane %v2514_v36, 4 }
 0x1f2   :  { %v2604_v37 = vpop.f32.mrf.mxu2 }
 0x1f3   :  { %v2705_v44 = vrot.slane %v2701_v40, 4  ;;  %v2678_v14 = vadd.f32 %v2677_v46, %v2514_v36  ;;  %v2605_v3 = vadd.f32 %v2604_v37, %v2592_v2 }
 0x1f5   :  { %v2706_v9 = vadd.f32 %v2705_v44, %v2701_v40  ;;  %v2679_v52 = vrot.slane %v2678_v14, 2 }
 0x1f6   :  { %v2515_v43 = vpop.f32.mrf.mxu0 }
 0x1f7   :  { %v2707_v32 = vrot.slane %v2706_v9, 2  ;;  %v2680_v59 = vadd.f32 %v2679_v52, %v2678_v14 }
 0x1f9   :  { %v2708_v60 = vadd.f32 %v2707_v32, %v2706_v9  ;;  %v2681_v63 = vrot.slane %v2680_v59, 1 }
 0x1fa   :  { %v2606_v45 = vpop.f32.mrf.mxu2 }
 0x1fb   :  { %v2709_v61 = vrot.slane %v2708_v60, 1  ;;  %v2682_v10 = vadd.f32 %v2681_v63, %v2680_v59 }
 0x1fd   :  { %v2710_v7 = vadd.f32 %v2709_v61, %v2708_v60 }
 0x1fe   :  { %v2565_v20 = vpop.f32.mrf.mxu0 }
 0x1ff   :  { %v2566_v11 = vadd.f32 %v2565_v20, %v2553_v47  ;;  %v2730_v15 = vsel %vm2729_vm1, %v2682_v10, %v2710_v7 }
 0x201   :  { %2674 = vst [vmem:[#allocation11 + $0x8] sm:$0xff] %v2566_v11  ;;  %v2683_v49 = vrot.slane %v2566_v11, 4  ;;  %v2702_v51 = vmul.f32 %v2566_v11, %v2566_v11 }
 0x203   :  { %v2684_v54 = vadd.f32 %v2683_v49, %v2566_v11  ;;  %v2711_v55 = vrot.slane %v2702_v51, 4 }
 0x205   :  { %v2685_v56 = vrot.slane %v2684_v54, 2  ;;  %v2712_v58 = vadd.f32 %v2711_v55, %v2702_v51 }
 0x206   :  { %v2567_v29 = vpop.f32.mrf.mxu0 }
 0x207   :  { %v2686_v1 = vadd.f32 %v2685_v56, %v2684_v54  ;;  %v2713_v34 = vrot.slane %v2712_v58, 2 }
 0x209   :  { %v2687_v39 = vrot.slane %v2686_v1, 1  ;;  %v2714_v62 = vadd.f32 %v2713_v34, %v2712_v58 }
 0x20b   :  { %v2715_v0 = vrot.slane %v2714_v62, 1  ;;  %v2688_v4 = vadd.f32 %v2687_v39, %v2686_v1 }
 0x20d   :  { %v2716_v5 = vadd.f32 %v2715_v0, %v2714_v62 }
 0x20e   :  { %v2617_v8 = vpop.f32.mrf.mxu0 }
 0x20f   :  { %v2618_v50 = vadd.f32 %v2617_v8, %v2605_v3  ;;  %v2731_v12 = vsel %vm2729_vm1, %v2688_v4, %v2716_v5 }
 0x210   :  { %v2738_v13 = vrot.slane %v2731_v12, 6 }
 0x211   :  { %2675 = vst [vmem:[#allocation11 + $0x10] sm:$0xff] %v2618_v50  ;;  %v2703_v19 = vmul.f32 %v2618_v50, %v2618_v50  ;;  %v2689_v48 = vrot.slane %v2618_v50, 4 }
 0x212   :  { %v2656_v41 = vpop.f32.mrf.mxu2  ;;  %v2742_v16 = vsel %vm2741_vm2, %v2730_v15, %v2738_v13 }
 0x213   :  { %v2717_v57 = vrot.slane %v2703_v19, 4  ;;  %v2690_v2 = vadd.f32 %v2689_v48, %v2618_v50  ;;  %v2657_v23 = vadd.f32 %v2656_v41, %v4769_v31 }
 0x215   :  { %v2718_v21 = vadd.f32 %v2717_v57, %v2703_v19  ;;  %v2691_v25 = vrot.slane %v2690_v2, 2 }
 0x216   :  { %v2619_v17 = vpop.f32.mrf.mxu0 }
 0x217   :  { %v2719_v22 = vrot.slane %v2718_v21, 2  ;;  %v2692_v53 = vadd.f32 %v2691_v25, %v2690_v2 }
 0x219   :  { %v2720_v27 = vadd.f32 %v2719_v22, %v2718_v21  ;;  %v2693_v37 = vrot.slane %v2692_v53, 1 }
 0x21a   :  { %v2658_v18 = vpop.f32.mrf.mxu2 }
 0x21b   :  { %v2721_v38 = vrot.slane %v2720_v27, 1  ;;  %v2694_v46 = vadd.f32 %v2693_v37, %v2692_v53 }
 0x21d   :  { %v2722_v43 = vadd.f32 %v2721_v38, %v2720_v27 }
 0x21f   :  { %v2732_v14 = vsel %vm2729_vm1, %v2694_v46, %v2722_v43 }
 0x220   :  { %v2739_v32 = vrot.slane %v2732_v14, 4 }
 0x22e   :  { %v2669_v24 = vpop.f32.mrf.mxu0 }
 0x22f   :  { %v2670_v26 = vadd.f32 %v2669_v24, %v2657_v23 }
 0x231   :  { %2676 = vst [vmem:[#allocation11 + $0x18] sm:$0xff] %v2670_v26  ;;  %v2695_v28 = vrot.slane %v2670_v26, 4  ;;  %v2704_v30 = vmul.f32 %v2670_v26, %v2670_v26 }
 0x232   :  { %2759 = dma.vmem_to_hbm [thread:$0]  %s2755_s4, 512, %s2757_s23, [#allocation4]  }
 0x233   :  { %v2696_v42 = vadd.f32 %v2695_v28, %v2670_v26  ;;  %v2723_v6 = vrot.slane %v2704_v30, 4 }
 0x235   :  { %v2697_v35 = vrot.slane %v2696_v42, 2  ;;  %v2724_v33 = vadd.f32 %v2723_v6, %v2704_v30 }
 0x236   :  { %v2671_v36 = vpop.f32.mrf.mxu0 }
 0x237   :  { %v2698_v40 = vadd.f32 %v2697_v35, %v2696_v42  ;;  %v2725_v31 = vrot.slane %v2724_v33, 2 }
 0x239   :  { %v2699_v44 = vrot.slane %v2698_v40, 1  ;;  %v2726_v45 = vadd.f32 %v2725_v31, %v2724_v33 }
 0x23b   :  { %v2727_v47 = vrot.slane %v2726_v45, 1  ;;  %v2700_v9 = vadd.f32 %v2699_v44, %v2698_v40 }
 0x23d   :  { %v2728_v20 = vadd.f32 %v2727_v47, %v2726_v45 }
 0x23f   :  { %v2733_v11 = vsel %vm2729_vm1, %v2700_v9, %v2728_v20 }
 0x240   :  { %v2740_v49 = vrot.slane %v2733_v11, 2 }
 0x242   :  { %v2744_v51 = vsel %vm2743_vm3, %v2739_v32, %v2740_v49 }
 0x243   :  { %v2746_v52 = vsel %vm2745_vm4, %v2742_v16, %v2744_v51 }
 0x244   :  { %2748 = vst [vmem:[#allocation12] sm:$0xff] %v2746_v52 }
 0x245   :  { %2770 = dma.vmem_to_hbm [thread:$0]  %s2766_s24, 128, %s2768_s27, [#allocation13]  }
 0x246   :  { %4591 = dma.done.wait [#allocation4], 512  }
 0x247   :  { %4592 = vsyncadd [#allocation4], 4294966784 }
 0x248   :  { %4593 = dma.done.wait [#allocation13], 128  }
 0x249   :  { %4594 = vsyncadd [#allocation13], 4294967168 }
 0x24a   :  { %2779 = vsyncpa [#allocation3], 1 }
 0x24b   :  { %2780 = vsyncpa [#allocation6], 1 }
 0x24c   :  { %2781 = vsyncpa [#allocation9], 1 }
 0x24d   :  { %2782 = vsyncpa [#allocation4], 1 }
 0x24e   :  { %2783 = vsyncpa [#allocation13], 1 }

</bundles_post_ra>
